<compile_context>
chip_gen: v7x
topology: tpu7x:2x2x1
jax: 0.10.0
libtpu: 0.0.40
codegen_flags: <defaults>
</compile_context>

<pallas_src>
import functools
import math

import jax
import jax.numpy as jnp
from jax.experimental import pallas as pl
from jax.experimental.pallas import tpu as pltpu


def _mha_kernel(q_ref, k_ref, v_ref,
                wq_ref, bq_ref, wk_ref, bk_ref, wv_ref, bv_ref, wo_ref, bo_ref,
                out_ref, attn_ref, *, n_heads, d_k, compute_dtype):
    """One (batch-tile, q-tile) grid step.

    q_ref:  (bt, tq, d_model)      k_ref/v_ref: (bt, Lk, d_model)
    out_ref:(bt, tq, d_model)      attn_ref:    (bt, n_heads, tq, Lk)
    """
    bt, tq, d_model = q_ref.shape
    lk = k_ref.shape[1]
    H = n_heads

    # ---- fused Q/K/V projections: one wide MXU matmul each, f32 accumulation.
    # The 1/sqrt(d_k) attention scale is pre-folded into wq/bq by the wrapper.
    q2 = q_ref[...].reshape(bt * tq, d_model)
    k2 = k_ref[...].reshape(bt * lk, d_model)
    v2 = v_ref[...].reshape(bt * lk, d_model)

    Q = jnp.dot(q2, wq_ref[...], preferred_element_type=jnp.float32) + bq_ref[...]
    K = jnp.dot(k2, wk_ref[...], preferred_element_type=jnp.float32) + bk_ref[...]
    V = jnp.dot(v2, wv_ref[...], preferred_element_type=jnp.float32) + bv_ref[...]

    # ---- head split -> a single flattened (head, batch) leading batch dim so the
    # attention matmuls are ONE batched contraction each (no per-head loop, no
    # lane-axis slicing, no concatenate).
    def to_heads(x, rows):
        x = x.astype(compute_dtype).reshape(bt * rows, H, d_k)
        x = pltpu.einshape("mhd->hmd", x)          # (H, bt*rows, d_k)
        return x.reshape(H * bt, rows, d_k)        # flat batch index = h*bt + b

    Qh = to_heads(Q, tq)
    Kh = to_heads(K, lk)
    Vh = to_heads(V, lk)   # reference module views V with d_k (requires d_v == d_k)

    # ---- scores: contract d_k directly (no explicit K^T transpose).
    s = jnp.einsum('bqd,bkd->bqk', Qh, Kh, preferred_element_type=jnp.float32)

    # ---- numerically-stable softmax; divide replaced by EUP reciprocal.
    s_max = jnp.max(s, axis=-1, keepdims=True)
    e = jnp.exp(s - s_max)
    denom = jnp.sum(e, axis=-1, keepdims=True)
    p = e * pl.reciprocal(denom, approx=True)
    # TODO(synk): training-mode dropout on p not implemented (eval-mode identity).
    # TODO(synk): mask is None in this forward; masked_fill path not implemented.

    # similarity_norm output: single lane-dense slab store of (bt, H, tq, Lk).
    attn_ref[...] = jnp.transpose(p.reshape(H, bt, tq, lk),
                                  (1, 0, 2, 3)).astype(attn_ref.dtype)

    # ---- context + fused output projection.
    ctx = jnp.einsum('bqk,bkd->bqd', p.astype(compute_dtype), Vh,
                     preferred_element_type=jnp.float32)             # (H*bt, tq, d_k)
    ctx = pltpu.einshape("hmd->mhd", ctx.reshape(H, bt * tq, d_k))   # (bt*tq, H, d_k)
    ctx = ctx.reshape(bt * tq, H * d_k).astype(compute_dtype)

    out = jnp.dot(ctx, wo_ref[...], preferred_element_type=jnp.float32) + bo_ref[...]
    out_ref[...] = out.reshape(bt, tq, d_model).astype(out_ref.dtype)


def multi_head_attention(query, key, value, params, *, n_heads, d_k, d_v,
                         compute_dtype=jnp.float32):
    """Pallas forward pass. Returns (x, similarity_norm) like the PyTorch module."""
    B, Lq, d_model = query.shape
    Lk = key.shape[1]
    assert d_v == d_k, "reference module views V with d_k; requires d_v == d_k"
    wq, bq, wk, bk, wv, bv, wo, bo = params

    # Fold the attention scale 1/sqrt(d_k) into the Q projection: removes the
    # (Lq, Lk)-sized elementwise divide from the kernel entirely.
    inv_scale = 1.0 / math.sqrt(d_k)
    wq = wq * inv_scale
    bq = bq * inv_scale

    # Feed the MXU in `compute_dtype` (bf16 recommended on v6e/v7x); biases,
    # accumulation and the softmax stay f32.
    cd = jnp.dtype(compute_dtype)
    q_in, k_in, v_in = (x.astype(cd) for x in (query, key, value))
    wq, wk, wv, wo = (w.astype(cd) for w in (wq, wk, wv, wo))
    bq, bk, bv, bo = (b.astype(jnp.float32) for b in (bq, bk, bv, bo))

    # ---- tiling -------------------------------------------------------------
    # q-tile: 128/256 query rows per step when the sequence allows it, so each
    # step feeds the MXU full tiles and the grid has enough steps to pipeline.
    if Lq % 256 == 0:
        tq = 256
    elif Lq % 128 == 0:
        tq = 128
    else:
        tq = Lq
    n_qt = Lq // tq

    # batch-tile: when the sequence tile is short (small models / tests), pack
    # several batch rows into one step so the projection matmuls see ~256 rows.
    bt = 1
    for cand in range(min(B, max(1, 256 // tq)), 0, -1):
        if B % cand == 0:
            bt = cand
            break
    n_bt = B // bt
    grid = (n_bt, n_qt)

    rep2 = lambda b, t: (0, 0)   # weights / biases: same full block every step

    # Advisory cost estimate so XLA can schedule around the (opaque) kernel.
    d_total = n_heads * d_k
    flops = (2 * B * Lq * d_model * d_total
             + 2 * 2 * B * Lk * d_model * d_total * n_qt   # K/V proj per q-tile
             + 2 * 2 * B * n_heads * Lq * Lk * d_k          # scores + context
             + 2 * B * Lq * d_total * d_model)              # output projection
    in_bytes = ((q_in.size + (k_in.size + v_in.size) * n_qt) * q_in.dtype.itemsize
                + (wq.size + wk.size + wv.size + wo.size) * wq.dtype.itemsize
                + (bq.size + bk.size + bv.size + bo.size) * 4)
    out_bytes = (B * Lq * d_model + B * n_heads * Lq * Lk) * 4
    cost = pl.CostEstimate(flops=int(flops),
                           transcendentals=int(B * n_heads * Lq * Lk),
                           bytes_accessed=int(in_bytes + out_bytes))

    kernel = functools.partial(_mha_kernel, n_heads=n_heads, d_k=d_k,
                               compute_dtype=cd)

    out, attn = pl.pallas_call(
        kernel,
        out_shape=(
            jax.ShapeDtypeStruct((B, Lq, d_model), jnp.float32),
            jax.ShapeDtypeStruct((B, n_heads, Lq, Lk), jnp.float32),
        ),
        grid=grid,
        in_specs=[
            pl.BlockSpec((bt, tq, d_model), lambda b, t: (b, t, 0)),   # query
            pl.BlockSpec((bt, Lk, d_model), lambda b, t: (b, 0, 0)),   # key
            pl.BlockSpec((bt, Lk, d_model), lambda b, t: (b, 0, 0)),   # value
            pl.BlockSpec(wq.shape, rep2), pl.BlockSpec(bq.shape, rep2),
            pl.BlockSpec(wk.shape, rep2), pl.BlockSpec(bk.shape, rep2),
            pl.BlockSpec(wv.shape, rep2), pl.BlockSpec(bv.shape, rep2),
            pl.BlockSpec(wo.shape, rep2), pl.BlockSpec(bo.shape, rep2),
        ],
        out_specs=(
            pl.BlockSpec((bt, tq, d_model), lambda b, t: (b, t, 0)),
            pl.BlockSpec((bt, n_heads, tq, Lk), lambda b, t: (b, 0, t, 0)),
        ),
        compiler_params=pltpu.CompilerParams(
            dimension_semantics=("parallel", "parallel")),
        cost_estimate=cost,
    )(q_in, k_in, v_in, wq, bq, wk, bk, wv, bv, wo, bo)
    return out, attn


def _reference(query, key, value, params, *, n_heads, d_k, d_v):
    """Plain-JAX reference mirroring the PyTorch forward (eval mode, mask=None)."""
    wq, bq, wk, bk, wv, bv, wo, bo = params
    B, Lq, d_model = query.shape
    Q = query @ wq + bq
    K = key @ wk + bk
    V = value @ wv + bv
    Q = Q.reshape(B, -1, n_heads, d_k).transpose(0, 2, 1, 3)
    K = K.reshape(B, -1, n_heads, d_k).transpose(0, 2, 1, 3)
    V = V.reshape(B, -1, n_heads, d_k).transpose(0, 2, 1, 3)
    sim = jnp.einsum('bhqd,bhkd->bhqk', Q, K) / jnp.sqrt(jnp.float32(d_k))
    sim_norm = jax.nn.softmax(sim, axis=-1)
    x = jnp.einsum('bhqk,bhkd->bhqd', sim_norm, V)
    x = x.transpose(0, 2, 1, 3).reshape(B, -1, d_model)
    x = x @ wo + bo
    return x, sim_norm


if __name__ == "__main__":
    # Small shapes consistent with the module: d_model = n_heads * d_k = n_heads * d_v
    B, L, d_model, n_heads = 2, 8, 32, 4
    d_k = d_v = d_model // n_heads

    key0 = jax.random.PRNGKey(0)
    keys = jax.random.split(key0, 12)

    def init_linear(kw, kb, fan_in, fan_out):
        bound = 1.0 / math.sqrt(fan_in)
        w = jax.random.uniform(kw, (fan_in, fan_out), jnp.float32, -bound, bound)
        b = jax.random.uniform(kb, (1, fan_out), jnp.float32, -bound, bound)
        return w, b

    wq, bq = init_linear(keys[0], keys[1], d_model, d_k * n_heads)
    wk, bk = init_linear(keys[2], keys[3], d_model, d_k * n_heads)
    wv, bv = init_linear(keys[4], keys[5], d_model, d_v * n_heads)
    wo, bo = init_linear(keys[6], keys[7], d_v * n_heads, d_model)
    params = (wq, bq, wk, bk, wv, bv, wo, bo)

    query = jax.random.normal(keys[8], (B, L, d_model), jnp.float32)
    key_in = jax.random.normal(keys[9], (B, L, d_model), jnp.float32)
    value = jax.random.normal(keys[10], (B, L, d_model), jnp.float32)

    ref_out, ref_attn = _reference(query, key_in, value, params,
                                   n_heads=n_heads, d_k=d_k, d_v=d_v)

    # f32 path: matches the PyTorch module (approx-reciprocal softmax denom only).
    out, attn = multi_head_attention(query, key_in, value, params,
                                     n_heads=n_heads, d_k=d_k, d_v=d_v,
                                     compute_dtype=jnp.float32)
    jax.block_until_ready(out)
    jax.block_until_ready(attn)
    assert out.shape == (B, L, d_model)
    assert attn.shape == (B, n_heads, L, L)
    assert jnp.allclose(out, ref_out, atol=2e-3, rtol=2e-3)
    assert jnp.allclose(attn, ref_attn, atol=2e-3, rtol=2e-3)

    # bf16-fed MXU path (v6e/v7x optimization); accumulation / softmax stay f32.
    out_bf, attn_bf = multi_head_attention(query, key_in, value, params,
                                           n_heads=n_heads, d_k=d_k, d_v=d_v,
                                           compute_dtype=jnp.bfloat16)
    jax.block_until_ready(out_bf)
    jax.block_until_ready(attn_bf)
    assert jnp.allclose(out_bf, ref_out, atol=7e-2, rtol=7e-2)
    assert jnp.allclose(attn_bf, ref_attn, atol=5e-2, rtol=5e-2)

    print("KERNEL_OK")
</pallas_src>

<mosaic_0001>
module attributes {stable_mosaic.version = 11 : i64} {
  func.func @_mha_kernel(%arg0: i32, %arg1: i32, %arg2: memref<2x8x32xf32, #tpu.memory_space<vmem>>, %arg3: memref<2x8x32xf32, #tpu.memory_space<vmem>>, %arg4: memref<2x8x32xf32, #tpu.memory_space<vmem>>, %arg5: memref<32x32xf32, #tpu.memory_space<vmem>>, %arg6: memref<1x32xf32, #tpu.memory_space<vmem>>, %arg7: memref<32x32xf32, #tpu.memory_space<vmem>>, %arg8: memref<1x32xf32, #tpu.memory_space<vmem>>, %arg9: memref<32x32xf32, #tpu.memory_space<vmem>>, %arg10: memref<1x32xf32, #tpu.memory_space<vmem>>, %arg11: memref<32x32xf32, #tpu.memory_space<vmem>>, %arg12: memref<1x32xf32, #tpu.memory_space<vmem>>, %arg13: memref<2x8x32xf32, #tpu.memory_space<vmem>>, %arg14: memref<2x4x8x8xf32, #tpu.memory_space<vmem>>) attributes {dimension_semantics = [#tpu.dimension_semantics<parallel>, #tpu.dimension_semantics<parallel>], iteration_bounds = array<i64: 1, 1>, scalar_prefetch = 0 : i64, scratch_operands = 0 : i64, tpu.core_type = #tpu.core_type<tc>, window_params = [{transform_indices = @transform_0, window_bounds = array<i64: 2, 8, 32>}, {transform_indices = @transform_1, window_bounds = array<i64: 2, 8, 32>}, {transform_indices = @transform_2, window_bounds = array<i64: 2, 8, 32>}, {pipeline_mode = #tpu.pipeline_mode<synchronous>, transform_indices = @transform_3, window_bounds = array<i64: 32, 32>}, {pipeline_mode = #tpu.pipeline_mode<synchronous>, transform_indices = @transform_4, window_bounds = array<i64: 1, 32>}, {pipeline_mode = #tpu.pipeline_mode<synchronous>, transform_indices = @transform_5, window_bounds = array<i64: 32, 32>}, {pipeline_mode = #tpu.pipeline_mode<synchronous>, transform_indices = @transform_6, window_bounds = array<i64: 1, 32>}, {pipeline_mode = #tpu.pipeline_mode<synchronous>, transform_indices = @transform_7, window_bounds = array<i64: 32, 32>}, {pipeline_mode = #tpu.pipeline_mode<synchronous>, transform_indices = @transform_8, window_bounds = array<i64: 1, 32>}, {pipeline_mode = #tpu.pipeline_mode<synchronous>, transform_indices = @transform_9, window_bounds = array<i64: 32, 32>}, {pipeline_mode = #tpu.pipeline_mode<synchronous>, transform_indices = @transform_10, window_bounds = array<i64: 1, 32>}, {transform_indices = @transform_11, window_bounds = array<i64: 2, 8, 32>}, {transform_indices = @transform_12, window_bounds = array<i64: 2, 4, 8, 8>}]} {
    %c0 = arith.constant 0 : index
    %c0_0 = arith.constant 0 : index
    %c0_1 = arith.constant 0 : index
    %0 = vector.load %arg2[%c0, %c0_0, %c0_1] : memref<2x8x32xf32, #tpu.memory_space<vmem>>, vector<2x8x32xf32>
    %1 = vector.shape_cast %0 : vector<2x8x32xf32> to vector<16x32xf32>
    %c0_2 = arith.constant 0 : index
    %c0_3 = arith.constant 0 : index
    %c0_4 = arith.constant 0 : index
    %2 = vector.load %arg3[%c0_2, %c0_3, %c0_4] : memref<2x8x32xf32, #tpu.memory_space<vmem>>, vector<2x8x32xf32>
    %3 = vector.shape_cast %2 : vector<2x8x32xf32> to vector<16x32xf32>
    %c0_5 = arith.constant 0 : index
    %c0_6 = arith.constant 0 : index
    %c0_7 = arith.constant 0 : index
    %4 = vector.load %arg4[%c0_5, %c0_6, %c0_7] : memref<2x8x32xf32, #tpu.memory_space<vmem>>, vector<2x8x32xf32>
    %5 = vector.shape_cast %4 : vector<2x8x32xf32> to vector<16x32xf32>
    %c0_8 = arith.constant 0 : index
    %c0_9 = arith.constant 0 : index
    %6 = vector.load %arg5[%c0_8, %c0_9] : memref<32x32xf32, #tpu.memory_space<vmem>>, vector<32x32xf32>
    %cst = arith.constant dense<0.000000e+00> : vector<16x32xf32>
    %7 = tpu.matmul %1, %6, %cst {dimension_numbers = #tpu.dot_dimension_numbers<[1], [0], [0], [1], [0, 0, 1, 1], [], []>} : vector<16x32xf32>, vector<32x32xf32>, vector<16x32xf32> -> vector<16x32xf32>
    %c0_10 = arith.constant 0 : index
    %c0_11 = arith.constant 0 : index
    %8 = vector.load %arg6[%c0_10, %c0_11] : memref<1x32xf32, #tpu.memory_space<vmem>>, vector<1x32xf32>
    %9 = vector.broadcast %8 : vector<1x32xf32> to vector<16x32xf32>
    %10 = arith.addf %7, %9 : vector<16x32xf32>
    %c0_12 = arith.constant 0 : index
    %c0_13 = arith.constant 0 : index
    %11 = vector.load %arg7[%c0_12, %c0_13] : memref<32x32xf32, #tpu.memory_space<vmem>>, vector<32x32xf32>
    %cst_14 = arith.constant dense<0.000000e+00> : vector<16x32xf32>
    %12 = tpu.matmul %3, %11, %cst_14 {dimension_numbers = #tpu.dot_dimension_numbers<[1], [0], [0], [1], [0, 0, 1, 1], [], []>} : vector<16x32xf32>, vector<32x32xf32>, vector<16x32xf32> -> vector<16x32xf32>
    %c0_15 = arith.constant 0 : index
    %c0_16 = arith.constant 0 : index
    %13 = vector.load %arg8[%c0_15, %c0_16] : memref<1x32xf32, #tpu.memory_space<vmem>>, vector<1x32xf32>
    %14 = vector.broadcast %13 : vector<1x32xf32> to vector<16x32xf32>
    %15 = arith.addf %12, %14 : vector<16x32xf32>
    %c0_17 = arith.constant 0 : index
    %c0_18 = arith.constant 0 : index
    %16 = vector.load %arg9[%c0_17, %c0_18] : memref<32x32xf32, #tpu.memory_space<vmem>>, vector<32x32xf32>
    %cst_19 = arith.constant dense<0.000000e+00> : vector<16x32xf32>
    %17 = tpu.matmul %5, %16, %cst_19 {dimension_numbers = #tpu.dot_dimension_numbers<[1], [0], [0], [1], [0, 0, 1, 1], [], []>} : vector<16x32xf32>, vector<32x32xf32>, vector<16x32xf32> -> vector<16x32xf32>
    %c0_20 = arith.constant 0 : index
    %c0_21 = arith.constant 0 : index
    %18 = vector.load %arg10[%c0_20, %c0_21] : memref<1x32xf32, #tpu.memory_space<vmem>>, vector<1x32xf32>
    %19 = vector.broadcast %18 : vector<1x32xf32> to vector<16x32xf32>
    %20 = arith.addf %17, %19 : vector<16x32xf32>
    %21 = vector.shape_cast %10 : vector<16x32xf32> to vector<16x4x8xf32>
    %22 = tpu.transpose %21, [1, 0, 2] : vector<16x4x8xf32> -> vector<4x16x8xf32>
    %23 = vector.shape_cast %22 : vector<4x16x8xf32> to vector<8x8x8xf32>
    %24 = vector.shape_cast %15 : vector<16x32xf32> to vector<16x4x8xf32>
    %25 = tpu.transpose %24, [1, 0, 2] : vector<16x4x8xf32> -> vector<4x16x8xf32>
    %26 = vector.shape_cast %25 : vector<4x16x8xf32> to vector<8x8x8xf32>
    %27 = vector.shape_cast %20 : vector<16x32xf32> to vector<16x4x8xf32>
    %28 = tpu.transpose %27, [1, 0, 2] : vector<16x4x8xf32> -> vector<4x16x8xf32>
    %29 = vector.shape_cast %28 : vector<4x16x8xf32> to vector<8x8x8xf32>
    "tpu.trace_start"() <{level = 10 : i32, message = "bqd,bkd->bqk"}> : () -> ()
    %cst_22 = arith.constant dense<0.000000e+00> : vector<8x8x8xf32>
    %30 = tpu.matmul %23, %26, %cst_22 {dimension_numbers = #tpu.dot_dimension_numbers<[2], [2], [1], [1], [0, 0, 0, 1, 1, 1], [0], [0]>} : vector<8x8x8xf32>, vector<8x8x8xf32>, vector<8x8x8xf32> -> vector<8x8x8xf32>
    "tpu.trace_stop"() : () -> ()
    %cst_23 = arith.constant dense<0xFF800000> : vector<8x8xf32>
    %31 = vector.multi_reduction <maximumf>, %30, %cst_23 [2] : vector<8x8x8xf32> to vector<8x8xf32>
    %32 = vector.shape_cast %31 : vector<8x8xf32> to vector<8x8x1xf32>
    %33 = vector.broadcast %32 : vector<8x8x1xf32> to vector<8x8x8xf32>
    %34 = arith.subf %30, %33 : vector<8x8x8xf32>
    %35 = math.exp %34 : vector<8x8x8xf32>
    %cst_24 = arith.constant dense<0.000000e+00> : vector<8x8xf32>
    %36 = vector.multi_reduction <add>, %35, %cst_24 [2] : vector<8x8x8xf32> to vector<8x8xf32>
    %37 = vector.shape_cast %36 : vector<8x8xf32> to vector<8x8x1xf32>
    %38 = tpu.reciprocal %37 {approx = true} : vector<8x8x1xf32> -> vector<8x8x1xf32>
    %39 = vector.broadcast %38 : vector<8x8x1xf32> to vector<8x8x8xf32>
    %40 = arith.mulf %35, %39 : vector<8x8x8xf32>
    %41 = vector.shape_cast %40 : vector<8x8x8xf32> to vector<4x2x8x8xf32>
    %42 = tpu.transpose %41, [1, 0, 2, 3] : vector<4x2x8x8xf32> -> vector<2x4x8x8xf32>
    %c0_25 = arith.constant 0 : index
    %c0_26 = arith.constant 0 : index
    %c0_27 = arith.constant 0 : index
    %c0_28 = arith.constant 0 : index
    %43 = vector.load %arg14[%c0_25, %c0_26, %c0_27, %c0_28] : memref<2x4x8x8xf32, #tpu.memory_space<vmem>>, vector<2x4x8x8xf32>
    tpu.vector_store %arg14[%c0_25, %c0_26, %c0_27, %c0_28], %42 {strides = array<i32>} : memref<2x4x8x8xf32, #tpu.memory_space<vmem>>, vector<2x4x8x8xf32>,
    "tpu.trace_start"() <{level = 10 : i32, message = "bqk,bkd->bqd"}> : () -> ()
    %cst_29 = arith.constant dense<0.000000e+00> : vector<8x8x8xf32>
    %44 = tpu.matmul %40, %29, %cst_29 {dimension_numbers = #tpu.dot_dimension_numbers<[2], [1], [1], [2], [0, 0, 0, 1, 1, 2], [0], [0]>} : vector<8x8x8xf32>, vector<8x8x8xf32>, vector<8x8x8xf32> -> vector<8x8x8xf32>
    "tpu.trace_stop"() : () -> ()
    %45 = vector.shape_cast %44 : vector<8x8x8xf32> to vector<4x16x8xf32>
    %46 = tpu.transpose %45, [1, 0, 2] : vector<4x16x8xf32> -> vector<16x4x8xf32>
    %47 = vector.shape_cast %46 : vector<16x4x8xf32> to vector<16x32xf32>
    %c0_30 = arith.constant 0 : index
    %c0_31 = arith.constant 0 : index
    %48 = vector.load %arg11[%c0_30, %c0_31] : memref<32x32xf32, #tpu.memory_space<vmem>>, vector<32x32xf32>
    %cst_32 = arith.constant dense<0.000000e+00> : vector<16x32xf32>
    %49 = tpu.matmul %47, %48, %cst_32 {dimension_numbers = #tpu.dot_dimension_numbers<[1], [0], [0], [1], [0, 0, 1, 1], [], []>} : vector<16x32xf32>, vector<32x32xf32>, vector<16x32xf32> -> vector<16x32xf32>
    %c0_33 = arith.constant 0 : index
    %c0_34 = arith.constant 0 : index
    %50 = vector.load %arg12[%c0_33, %c0_34] : memref<1x32xf32, #tpu.memory_space<vmem>>, vector<1x32xf32>
    %51 = vector.broadcast %50 : vector<1x32xf32> to vector<16x32xf32>
    %52 = arith.addf %49, %51 : vector<16x32xf32>
    %53 = vector.shape_cast %52 : vector<16x32xf32> to vector<2x8x32xf32>
    %c0_35 = arith.constant 0 : index
    %c0_36 = arith.constant 0 : index
    %c0_37 = arith.constant 0 : index
    %54 = vector.load %arg13[%c0_35, %c0_36, %c0_37] : memref<2x8x32xf32, #tpu.memory_space<vmem>>, vector<2x8x32xf32>
    tpu.vector_store %arg13[%c0_35, %c0_36, %c0_37], %53 {strides = array<i32>} : memref<2x8x32xf32, #tpu.memory_space<vmem>>, vector<2x8x32xf32>,
    return
  }
  func.func @transform_0(%arg0: i32, %arg1: i32) -> (i32, i32, i32) {
    %c0_i32 = arith.constant 0 : i32
    %c0_i32_0 = arith.constant 0 : i32
    return %arg0, %arg1, %c0_i32 : i32, i32, i32
  }
  func.func @transform_1(%arg0: i32, %arg1: i32) -> (i32, i32, i32) {
    %c0_i32 = arith.constant 0 : i32
    %c0_i32_0 = arith.constant 0 : i32
    %c0_i32_1 = arith.constant 0 : i32
    return %arg0, %c0_i32, %c0_i32_0 : i32, i32, i32
  }
  func.func @transform_2(%arg0: i32, %arg1: i32) -> (i32, i32, i32) {
    %c0_i32 = arith.constant 0 : i32
    %c0_i32_0 = arith.constant 0 : i32
    %c0_i32_1 = arith.constant 0 : i32
    return %arg0, %c0_i32, %c0_i32_0 : i32, i32, i32
  }
  func.func @transform_3(%arg0: i32, %arg1: i32) -> (i32, i32) {
    %c0_i32 = arith.constant 0 : i32
    %c0_i32_0 = arith.constant 0 : i32
    %c0_i32_1 = arith.constant 0 : i32
    return %c0_i32, %c0_i32_0 : i32, i32
  }
  func.func @transform_4(%arg0: i32, %arg1: i32) -> (i32, i32) {
    %c0_i32 = arith.constant 0 : i32
    %c0_i32_0 = arith.constant 0 : i32
    %c0_i32_1 = arith.constant 0 : i32
    return %c0_i32, %c0_i32_0 : i32, i32
  }
  func.func @transform_5(%arg0: i32, %arg1: i32) -> (i32, i32) {
    %c0_i32 = arith.constant 0 : i32
    %c0_i32_0 = arith.constant 0 : i32
    %c0_i32_1 = arith.constant 0 : i32
    return %c0_i32, %c0_i32_0 : i32, i32
  }
  func.func @transform_6(%arg0: i32, %arg1: i32) -> (i32, i32) {
    %c0_i32 = arith.constant 0 : i32
    %c0_i32_0 = arith.constant 0 : i32
    %c0_i32_1 = arith.constant 0 : i32
    return %c0_i32, %c0_i32_0 : i32, i32
  }
  func.func @transform_7(%arg0: i32, %arg1: i32) -> (i32, i32) {
    %c0_i32 = arith.constant 0 : i32
    %c0_i32_0 = arith.constant 0 : i32
    %c0_i32_1 = arith.constant 0 : i32
    return %c0_i32, %c0_i32_0 : i32, i32
  }
  func.func @transform_8(%arg0: i32, %arg1: i32) -> (i32, i32) {
    %c0_i32 = arith.constant 0 : i32
    %c0_i32_0 = arith.constant 0 : i32
    %c0_i32_1 = arith.constant 0 : i32
    return %c0_i32, %c0_i32_0 : i32, i32
  }
  func.func @transform_9(%arg0: i32, %arg1: i32) -> (i32, i32) {
    %c0_i32 = arith.constant 0 : i32
    %c0_i32_0 = arith.constant 0 : i32
    %c0_i32_1 = arith.constant 0 : i32
    return %c0_i32, %c0_i32_0 : i32, i32
  }
  func.func @transform_10(%arg0: i32, %arg1: i32) -> (i32, i32) {
    %c0_i32 = arith.constant 0 : i32
    %c0_i32_0 = arith.constant 0 : i32
    %c0_i32_1 = arith.constant 0 : i32
    return %c0_i32, %c0_i32_0 : i32, i32
  }
  func.func @transform_11(%arg0: i32, %arg1: i32) -> (i32, i32, i32) {
    %c0_i32 = arith.constant 0 : i32
    %c0_i32_0 = arith.constant 0 : i32
    return %arg0, %arg1, %c0_i32 : i32, i32, i32
  }
  func.func @transform_12(%arg0: i32, %arg1: i32) -> (i32, i32, i32, i32) {
    %c0_i32 = arith.constant 0 : i32
    %c0_i32_0 = arith.constant 0 : i32
    %c0_i32_1 = arith.constant 0 : i32
    return %arg0, %c0_i32, %arg1, %c0_i32_0 : i32, i32, i32, i32
  }
}

</mosaic_0001>

<bundles_post_ra>
// kernel: tpu_custom_call.1
= control target key start
LH: loop header
LB: loop body
LE: loop exit
PB: predicated region body
PF: predicated region fallthrough
CT: control target
= control target key end

     0   :  { %18 = vsyncpa [#allocation3], 0  ;;  %s4189_s0 = inlined_call_operand.hbm [shape: f32[2,8,32], index: 0, kind: input, shape index: {}]   ;;  %s4190_s1 = inlined_call_operand.hbm [shape: f32[2,8,32], index: 1, kind: input, shape index: {}]   ;;  %s4191_s2 = inlined_call_operand.hbm [shape: f32[2,8,32], index: 2, kind: input, shape index: {}]   ;;  %s4192_s3 = inlined_call_operand.hbm [shape: f32[32,32], index: 3, kind: input, shape index: {}]   ;;  %s4193_s4 = inlined_call_operand.vmem [shape: f32[1,32], index: 4, kind: input, shape index: {}]   ;;  %s4194_s5 = inlined_call_operand.hbm [shape: f32[32,32], index: 5, kind: input, shape index: {}]   ;;  %s4195_s6 = inlined_call_operand.vmem [shape: f32[1,32], index: 6, kind: input, shape index: {}]   ;;  %s4196_s7 = inlined_call_operand.hbm [shape: f32[32,32], index: 7, kind: input, shape index: {}]   ;;  %s4197_s8 = inlined_call_operand.hbm [shape: f32[1,32], index: 8, kind: input, shape index: {}]   ;;  %s4198_s9 = inlined_call_operand.vmem [shape: f32[32,32], index: 9, kind: input, shape index: {}]   ;;  %s4199_s10 = inlined_call_operand.vmem [shape: f32[1,32], index: 10, kind: input, shape index: {}]   ;;  %s4200_s11 = inlined_call_operand.hbm [shape: f32[2,8,32], index: 11, kind: output, shape index: {0}]   ;;  %s4201_s12 = inlined_call_operand.hbm [shape: f32[2,4,8,8], index: 12, kind: output, shape index: {1}]  }
   0x1   :  { %19 = vsyncpa [#allocation6], 0 }
   0x2   :  { %20 = vsyncpa [#allocation9], 0 }
   0x3   :  { %21 = vsyncpa [#allocation12], 0 }
   0x4   :  { %22 = vsyncpa [#allocation4], 0 }
   0x5   :  { %23 = vsyncpa [#allocation16], 0  ;;  %s3543_s21 = smov [#allocation5]   ;;  %s3544_s23 = smov [#allocation8]  }
   0x6   :  { %s41_s22 = sshll.u32 %s3543_s21, 4  ;;  %s65_s24 = sshll.u32 %s3544_s23, 4  ;;  %s42_s22 = int_to_ptr.vmem [resolvable:$true] %s41_s22  ;;  %s3628_s24 = int_to_ptr.vmem [resolvable:$true] %s65_s24 }
   0x7   :  { %s3333_s27 = scalar_lea.hbm %s4190_s1, 256 }
   0x8   :  { %p3334_p0 = scmp.ne.s32.totalorder %s4190_s1, %s3333_s27  ;;  %p3337_p1 = scmp.lt.u32.totalorder %s3333_s27, %s4190_s1 }
   0xa   :  { %p3339_p2 = pnand %p3337_p1, %p3334_p0 }
   0xc   :  { %3342 = shalt.err (!%p3339_p2)
}
   0xd   :  { %s3343_s14 = scalar_lea.vmem %s42_s22, 256  ;;  %p3348_p4 = scmp.lt.s32.totalorder %s42_s22, %s42_s22 }
   0xe   :  { %p3344_p3 = scmp.ne.s32.totalorder %s42_s22, %s3343_s14  ;;  %p3349_p5 = scmp.lt.s32.totalorder %s3343_s14, %s3343_s14 }
  0x10   :  { %p3350_p6 = por %p3349_p5, %p3348_p4 }
  0x12   :  { %p3351_p7 = pnand %p3350_p6, %p3344_p3 }
  0x14   :  { %3354 = shalt.err (!%p3351_p7)
}
  0x15   :  { %s3545_s15 = smov 128   ;;  %s3546_s16 = smov 8  }
  0x16   :  { %47 = dma.hbm_to_vmem [thread:$0]  %s4190_s1, 256, %s42_s22, [#allocation6], %s3545_s15, %s3545_s15, %s3546_s16  }
  0x17   :  { %s3355_s21 = scalar_lea.hbm %s4192_s3, 512 }
  0x18   :  { %p3356_p8 = scmp.ne.s32.totalorder %s4192_s3, %s3355_s21  ;;  %p3359_p9 = scmp.lt.u32.totalorder %s3355_s21, %s4192_s3 }
  0x1a   :  { %p3361_p10 = pnand %p3359_p9, %p3356_p8 }
  0x1c   :  { %3364 = shalt.err (!%p3361_p10)
}
  0x1d   :  { %s3365_s28 = scalar_lea.vmem %s3628_s24, 512  ;;  %p3370_p12 = scmp.lt.s32.totalorder %s3628_s24, %s3628_s24 }
  0x1e   :  { %p3366_p11 = scmp.ne.s32.totalorder %s3628_s24, %s3365_s28  ;;  %p3371_p13 = scmp.lt.s32.totalorder %s3365_s28, %s3365_s28 }
  0x20   :  { %p3372_p0 = por %p3371_p13, %p3370_p12 }
  0x22   :  { %p3373_p1 = pnand %p3372_p0, %p3366_p11 }
  0x24   :  { %3376 = shalt.err (!%p3373_p1)
}
  0x25   :  { %71 = dma.hbm_to_vmem [thread:$0]  %s4192_s3, 512, %s3628_s24, [#allocation9], %s3545_s15, %s3545_s15, %s3546_s16  }
  0x26   :  { %s3547_s29 = smov [#allocation11]   ;;  %s3548_s13 = smov [#allocation2]  }
  0x27   :  { %s93_s30 = sshll.u32 %s3547_s29, 4  ;;  %s29_s14 = sshll.u32 %s3548_s13, 4  ;;  %s94_s30 = int_to_ptr.vmem [resolvable:$true] %s93_s30  ;;  %s3665_s14 = int_to_ptr.vmem [resolvable:$true] %s29_s14 }
  0x28   :  { %s3377_s19 = scalar_lea.hbm %s4196_s7, 512 }
  0x29   :  { %p3378_p2 = scmp.ne.s32.totalorder %s4196_s7, %s3377_s19  ;;  %p3381_p3 = scmp.lt.u32.totalorder %s3377_s19, %s4196_s7 }
  0x2b   :  { %p3383_p4 = pnand %p3381_p3, %p3378_p2 }
  0x2d   :  { %3386 = shalt.err (!%p3383_p4)
}
  0x2e   :  { %s3387_s3 = scalar_lea.vmem %s94_s30, 512  ;;  %p3392_p6 = scmp.lt.s32.totalorder %s94_s30, %s94_s30 }
  0x2f   :  { %p3388_p5 = scmp.ne.s32.totalorder %s94_s30, %s3387_s3  ;;  %p3393_p7 = scmp.lt.s32.totalorder %s3387_s3, %s3387_s3 }
  0x31   :  { %p3394_p8 = por %p3393_p7, %p3392_p6 }
  0x33   :  { %p3395_p9 = pnand %p3394_p8, %p3388_p5 }
  0x35   :  { %3398 = shalt.err (!%p3395_p9)
}
  0x36   :  { %99 = dma.hbm_to_vmem [thread:$0]  %s4196_s7, 512, %s94_s30, [#allocation12], %s3545_s15, %s3545_s15, %s3546_s16  }
  0x37   :  { %s3399_s1 = scalar_lea.hbm %s4189_s0, 256 }
  0x38   :  { %p3400_p10 = scmp.ne.s32.totalorder %s4189_s0, %s3399_s1  ;;  %p3403_p11 = scmp.lt.u32.totalorder %s3399_s1, %s4189_s0 }
  0x3a   :  { %p3405_p12 = pnand %p3403_p11, %p3400_p10 }
  0x3c   :  { %3408 = shalt.err (!%p3405_p12)
}
  0x3d   :  { %s3409_s18 = scalar_lea.vmem %s3665_s14, 256  ;;  %p3414_p0 = scmp.lt.s32.totalorder %s3665_s14, %s3665_s14 }
  0x3e   :  { %p3410_p13 = scmp.ne.s32.totalorder %s3665_s14, %s3409_s18  ;;  %p3415_p1 = scmp.lt.s32.totalorder %s3409_s18, %s3409_s18 }
  0x40   :  { %p3416_p2 = por %p3415_p1, %p3414_p0 }
  0x42   :  { %p3417_p3 = pnand %p3416_p2, %p3410_p13 }
  0x44   :  { %3420 = shalt.err (!%p3417_p3)
}
  0x45   :  { %35 = dma.hbm_to_vmem [thread:$0]  %s4189_s0, 256, %s3665_s14, [#allocation3], %s3545_s15, %s3545_s15, %s3546_s16  }
  0x46   :  { %s3549_s19 = smov [#allocation7]   ;;  %s3550_s21 = smov [#allocation10]  }
  0x47   :  { %s53_s20 = sshll.u32 %s3549_s19, 4  ;;  %s79_s23 = sshll.u32 %s3550_s21, 4  ;;  %s54_s20 = int_to_ptr.vmem [resolvable:$true] %s53_s20  ;;  %s3702_s23 = int_to_ptr.vmem [resolvable:$true] %s79_s23 }
  0x48   :  { %s3421_s24 = scalar_lea.hbm %s4191_s2, 256 }
  0x49   :  { %p3422_p4 = scmp.ne.s32.totalorder %s4191_s2, %s3421_s24  ;;  %p3425_p5 = scmp.lt.u32.totalorder %s3421_s24, %s4191_s2 }
  0x4b   :  { %p3427_p6 = pnand %p3425_p5, %p3422_p4 }
  0x4d   :  { %3430 = shalt.err (!%p3427_p6)
}
  0x4e   :  { %s3431_s0 = scalar_lea.vmem %s54_s20, 256  ;;  %p3436_p8 = scmp.lt.s32.totalorder %s54_s20, %s54_s20 }
  0x4f   :  { %p3432_p7 = scmp.ne.s32.totalorder %s54_s20, %s3431_s0  ;;  %p3437_p9 = scmp.lt.s32.totalorder %s3431_s0, %s3431_s0 }
  0x51   :  { %p3438_p10 = por %p3437_p9, %p3436_p8 }
  0x53   :  { %p3439_p11 = pnand %p3438_p10, %p3432_p7 }
  0x55   :  { %3442 = shalt.err (!%p3439_p11)
}
  0x56   :  { %59 = dma.hbm_to_vmem [thread:$0]  %s4191_s2, 256, %s54_s20, [#allocation6], %s3545_s15, %s3545_s15, %s3546_s16  }
  0x57   :  { %s3443_s17 = scalar_lea.hbm %s4194_s5, 512 }
  0x58   :  { %p3444_p12 = scmp.ne.s32.totalorder %s4194_s5, %s3443_s17  ;;  %p3447_p13 = scmp.lt.u32.totalorder %s3443_s17, %s4194_s5 }
  0x5a   :  { %p3449_p0 = pnand %p3447_p13, %p3444_p12 }
  0x5c   :  { %3452 = shalt.err (!%p3449_p0)
}
  0x5d   :  { %s3453_s21 = scalar_lea.vmem %s3702_s23, 512  ;;  %p3458_p2 = scmp.lt.s32.totalorder %s3702_s23, %s3702_s23 }
  0x5e   :  { %p3454_p1 = scmp.ne.s32.totalorder %s3702_s23, %s3453_s21  ;;  %p3459_p3 = scmp.lt.s32.totalorder %s3453_s21, %s3453_s21 }
  0x60   :  { %p3460_p4 = por %p3459_p3, %p3458_p2 }
  0x62   :  { %p3461_p5 = pnand %p3460_p4, %p3454_p1 }
  0x64   :  { %3464 = shalt.err (!%p3461_p5)
}
  0x65   :  { %85 = dma.hbm_to_vmem [thread:$0]  %s4194_s5, 512, %s3702_s23, [#allocation9], %s3545_s15, %s3545_s15, %s3546_s16  }
  0x66   :  { %s3551_s25 = smov [#allocation13]   ;;  %s3465_s27 = scalar_lea.hbm %s4197_s8, 16 }
  0x67   :  { %s106_s3 = sshll.u32 %s3551_s25, 4  ;;  %p3466_p6 = scmp.ne.s32.totalorder %s4197_s8, %s3465_s27  ;;  %s107_s3 = int_to_ptr.vmem [resolvable:$true] %s106_s3 }
  0x68   :  { %p3469_p7 = scmp.lt.u32.totalorder %s3465_s27, %s4197_s8 }
  0x6a   :  { %p3471_p8 = pnand %p3469_p7, %p3466_p6 }
  0x6c   :  { %3474 = shalt.err (!%p3471_p8)
}
  0x6d   :  { %s3475_s22 = scalar_lea.vmem %s107_s3, 16  ;;  %s3479_s5 = scalar_lea.vmem %s107_s3, 32 }
  0x6e   :  { %p3476_p9 = scmp.ne.s32.totalorder %s107_s3, %s3475_s22  ;;  %p3480_p10 = scmp.lt.s32.totalorder %s107_s3, %s107_s3 }
  0x6f   :  { %p3481_p11 = scmp.lt.s32.totalorder %s3479_s5, %s3475_s22 }
  0x71   :  { %p3482_p12 = por %p3481_p11, %p3480_p10 }
  0x73   :  { %p3483_p13 = pnand %p3482_p12, %p3476_p9 }
  0x75   :  { %3486 = shalt.err (!%p3483_p13)
}
  0x76   :  { %109 = dma.hbm_to_vmem [thread:$0]  %s4197_s8, 16, %s107_s3, [#allocation12]  }
  0x77   :  { %3531 = dma.done.wait [#allocation3], 256  }
  0x78   :  { %3532 = vsyncadd [#allocation3], 4294967040 }
  0x79   :  { %3533 = dma.done.wait [#allocation6], 512  }
  0x7a   :  { %3534 = vsyncadd [#allocation6], 4294966784 }
  0x7b   :  { %3535 = dma.done.wait [#allocation9], 1024  }
  0x7c   :  { %3536 = vsyncadd [#allocation9], 4294966272 }
  0x7d   :  { %3537 = dma.done.wait [#allocation12], 528  }
  0x7e   :  { %3538 = vsyncadd [#allocation12], 4294966768  ;;  %v234_v0 = vld [vmem:[#allocation10] sm:$0xff]  ;;  %v235_v1 = vld [vmem:[#allocation10 + $0x8] sm:$0xff]  ;;  %vm152_vm0 = vcmask 261120   ;;  %s3552_s7 = smov 112   ;;  %v443_v37 = vlaneseq }
  0x7f   :  { %v141_v2 = vld [vmem:[#allocation8] sm:$0xff]  ;;  %v3257_v3 = vpack.c.bf16 %v235_v1, %v234_v0  ;;  %v142_v4 = vld [vmem:[#allocation8 + $0x8] sm:$0xff]  ;;  %v236_v5 = vld [vmem:[#allocation10 + $0x10] sm:$0xff]  ;;  %s3553_s30 = smov 120   ;;  %v3555_v33 = vmov 0.0   ;;  %vm3556_vm1 = vmmov 0  }
  0x80   :  { %v237_v6 = vld [vmem:[#allocation10 + $0x18] sm:$0xff]  ;;  %v3249_v7 = vpack.c.bf16 %v142_v4, %v141_v2  ;;  %v143_v9 = vld [vmem:[#allocation8 + $0x10] sm:$0xff]  ;;  %v137_v11 = vld [vmem:[#allocation5] sm:$0xff]  ;;  %v3557_v35 = vmov 1983009808   ;;  %v444_v41 = vshrl.u32 %v443_v37, 7 }
  0x81   :  { %v3261_v8 = vpack.c.bf16 %v237_v6, %v236_v5  ;;  %v144_v10 = vld [vmem:[#allocation8 + $0x18] sm:$0xff]  ;;  %3258 = vmatprep.subr.bf16.mxu1 %v3257_v3  ;;  %3144 = vmatprep.mubr.msk.f32.mxu1 %vm152_vm0, %v137_v11  ;;  %v135_v13 = vld [vmem:[#allocation2] sm:$0xff]  ;;  %v138_v14 = vld [vmem:[#allocation5 + $0x8] sm:$0xff]  ;;  %v441_v36 = vunpack.c.l.s4 %v3557_v35  ;;  %v3558_v38 = vmov 1934713408   ;;  %vm1294_vm2 = vcmask 64512  }
  0x82   :  { %v3253_v12 = vpack.c.bf16 %v144_v10, %v143_v9  ;;  %3260 = vmatpush3.bf16.msra.mxu1 %v3257_v3  ;;  %3250 = vmatprep.subr.bf16.mxu0 %v3249_v7  ;;  %v136_v15 = vld [vmem:[#allocation2 + $0x8] sm:$0xff]  ;;  %v3020_v16 = vld [vmem:[%s4195_s6] ss:$0 sm:$0xff]  ;;  %v326_v24 = vld [vmem:[#allocation11] sm:$0xff]  ;;  %s3554_s6 = smov 104   ;;  %v473_v39 = vunpack.c.l.s4 %v3558_v38  ;;  %s3559_s20 = smov 16  }
  0x83   :  { %3252 = vmatpush3.bf16.msra.mxu0 %v3249_v7  ;;  %3262 = vmatprep.subr.bf16.mxu1 %v3261_v8  ;;  %v3017_v18 = vld [vmem:[%s4193_s4] ss:$0 sm:$0xff]  ;;  %v327_v25 = vld [vmem:[#allocation11 + $0x8] sm:$0xff]  ;;  %v329_v30 = vld [vmem:[#allocation11 + $0x18] sm:$0xff]  ;;  %v442_v40 = vunpack.c.0.s8 %v441_v36  ;;  %vm2881_vm3 = vcmask 130048   ;;  %vm2884_vm4 = vcmask 195584  }
  0x84   :  { %3254 = vmatprep.subr.bf16.mxu0 %v3253_v12  ;;  %3133 = vmatprep.mubr.msk.f32.mxu0 %vm152_vm0, %v135_v13  ;;  %v3265_v26 = vpack.c.bf16 %v327_v25, %v326_v24  ;;  %v328_v29 = vld [vmem:[#allocation11 + $0x10] sm:$0xff]  ;;  %v140_v34 = vld [vmem:[#allocation7 + $0x8] sm:$0xff]  ;;  %v474_v44 = vunpack.c.0.s8 %v473_v39  ;;  %s3561_s27 = smov [#allocation15]  }
  0x85   :  { %v3269_v31 = vpack.c.bf16 %v329_v30, %v328_v29  ;;  %v139_v32 = vld [vmem:[#allocation7] sm:$0xff]  ;;  %v3796_v45 = vsub.s32 %v442_v40, %v444_v41  ;;  %s2998_s28 = sshll.u32 %s3561_s27, 4  ;;  %s2999_s28 = int_to_ptr.vmem [resolvable:$true] %s2998_s28 }
  0x86   :  { %3264 = vmatpush3.bf16.msra.mxu1 %v3261_v8  ;;  %v3800_v52 = vsub.s32 %v474_v44, %v444_v41  ;;  %s3487_s1 = scalar_lea.vmem %s2999_s28, 1024  ;;  %p3492_p1 = scmp.lt.s32.totalorder %s2999_s28, %s2999_s28 }
  0x87   :  { %3256 = vmatpush3.bf16.msra.mxu0 %v3253_v12  ;;  %3158 = vmatprep.subr.mxu1 %v3555_v33  ;;  %p3488_p0 = scmp.ne.s32.totalorder %s2999_s28, %s3487_s1  ;;  %p3493_p2 = scmp.lt.s32.totalorder %s3487_s1, %s3487_s1 }
  0x88   :  { %3266 = vmatprep.subr.bf16.mxu0 %v3265_v26 }
  0x89   :  { %3145 = vmatmul.mubr.msk.f32.vlgmr.msra.gmra.mrb[0].mxu1 %vm152_vm0, %v138_v14  ;;  %p3494_p3 = por %p3493_p2, %p3492_p1 }
  0x8a   :  { %3134 = vmatmul.mubr.msk.f32.vlgmr.msra.gmra.mrb[0].mxu0 %vm152_vm0, %v136_v15  ;;  %3160 = vmatprep.mubr.msk.f32.mxu1 %vm3556_vm1, %v3555_v33 }
  0x8b   :  { %3268 = vmatpush3.bf16.msra.mxu0 %v3265_v26  ;;  %3155 = vmatprep.mubr.msk.f32.mxu0 %vm152_vm0, %v139_v32  ;;  %p3495_p4 = pnand %p3494_p3, %p3488_p0 }
  0x8c   :  { %3270 = vmatprep.subr.bf16.mxu0 %v3269_v31 }
  0x8f   :  { %3272 = vmatpush3.bf16.msra.mxu0 %v3269_v31 }
  0x90   :  { %3178 = vmatprep.subr.mxu0 %v3555_v33 }
  0x92   :  { %3156 = vmatmul.mubr.msk.f32.vlgmr.msra.gmra.mrb[2].mxu0 %vm152_vm0, %v140_v34 }
  0x93   :  { %3180 = vmatprep.mubr.msk.f32.mxu0 %vm3556_vm1, %v3555_v33 }
 0x15c   :  { %v3146_v17 = vpop.f32.mrb[0].mxu1 }
 0x15d   :  { %v323_v19 = vadd.f32 %v3146_v17, %v3020_v16  ;;  %v317_v20 = vpop.f32.mrb[1].mxu1  ;;  %v3135_v21 = vpop.f32.mrb[0].mxu0 }
 0x15e   :  { %v225_v22 = vpop.f32.mrb[1].mxu0  ;;  %v3763_v23 = vadd.f32 %v3135_v21, %v3017_v18  ;;  %v3768_v27 = vadd.f32 %v3020_v16, %v317_v20 }
 0x15f   :  { %720 = vrot.lane.b32.xlu1 %v323_v19, %s3552_s7  ;;  %714 = vrot.lane.b32.xlu0 %v323_v19, %s3553_s30  ;;  %v3774_v28 = vadd.f32 %v3017_v18, %v225_v22 }
 0x163   :  { %726 = vrot.lane.b32.xlu0 %v323_v19, %s3554_s6  ;;  %422 = vrot.lane.b32.xlu1 %v3763_v23, %s3553_s30 }
 0x167   :  { %712 = vrot.lane.b32.xlu0 %v3768_v27, %s3553_s30  ;;  %724 = vrot.lane.b32.xlu1 %v3768_v27, %s3554_s6 }
 0x16b   :  { %718 = vrot.lane.b32.xlu0 %v3768_v27, %s3552_s7  ;;  %420 = vrot.lane.b32.xlu1 %v3774_v28, %s3553_s30 }
 0x16f   :  { %426 = vrot.lane.b32.xlu0 %v3774_v28, %s3552_s7  ;;  %432 = vrot.lane.b32.xlu1 %v3774_v28, %s3554_s6 }
 0x173   :  { %428 = vrot.lane.b32.xlu0 %v3763_v23, %s3552_s7  ;;  %434 = vrot.lane.b32.xlu1 %v3763_v23, %s3554_s6 }
 0x1d1   :  { %v721_v42 = vpop.permute.xlu1 %720  ;;  %v715_v43 = vpop.permute.xlu0 %714 }
 0x1d2   :  { %v798_v46 = vcombine.low %v323_v19, %v721_v42  ;;  %v799_v47 = vcombine.high %v323_v19, %v721_v42 }
 0x1d4   :  { %v806_v53 = vrot.slane %v798_v46, %v3796_v45  ;;  %v813_v54 = vrot.slane %v799_v47, %v3796_v45 }
 0x1d5   :  { %v727_v48 = vpop.permute.xlu0 %726  ;;  %v3798_v49 = vpop.permute.xlu1 %422 }
 0x1d6   :  { %v814_v50 = vcombine.low %v715_v43, %v727_v48  ;;  %v815_v51 = vcombine.high %v715_v43, %v727_v48 }
 0x1d8   :  { %v822_v55 = vrot.slane %v814_v50, %v3796_v45  ;;  %v829_v56 = vrot.slane %v815_v51, %v3796_v45 }
 0x1d9   :  { %v713_v57 = vpop.permute.xlu0 %712  ;;  %v725_v58 = vpop.permute.xlu1 %724 }
 0x1da   :  { %v830_v59 = vcombine.low %v806_v53, %v822_v55  ;;  %v831_v60 = vcombine.high %v806_v53, %v822_v55  ;;  %v846_v61 = vcombine.low %v813_v54, %v829_v56  ;;  %v847_v62 = vcombine.high %v813_v54, %v829_v56 }
 0x1db   :  { %v746_v3 = vcombine.low %v713_v57, %v725_v58  ;;  %v747_v4 = vcombine.high %v713_v57, %v725_v58 }
 0x1dc   :  { %v838_v63 = vrot.slane %v830_v59, %v3800_v52  ;;  %v845_v0 = vrot.slane %v831_v60, %v3800_v52  ;;  %v854_v1 = vrot.slane %v846_v61, %v3800_v52  ;;  %v861_v2 = vrot.slane %v847_v62, %v3800_v52 }
 0x1dd   :  { %v719_v5 = vpop.permute.xlu0 %718  ;;  %v421_v6 = vpop.permute.xlu1 %420  ;;  %v754_v17 = vrot.slane %v746_v3, %v3796_v45  ;;  %v761_v18 = vrot.slane %v747_v4, %v3796_v45 }
 0x1de   :  { %v934_v7 = vcombine.low %v838_v63, %v845_v0  ;;  %v3032_v8 = vcombine.high %v838_v63, %v845_v0  ;;  %v950_v9 = vcombine.low %v854_v1, %v861_v2  ;;  %v3033_v10 = vcombine.high %v854_v1, %v861_v2 }
 0x1df   :  { %v730_v11 = vcombine.low %v3768_v27, %v719_v5  ;;  %v731_v12 = vcombine.high %v3768_v27, %v719_v5 }
 0x1e0   :  { %v3813_v13 = vrot.slane %v934_v7, %v3796_v45  ;;  %v3816_v14 = vrot.slane %v3032_v8, %v3796_v45  ;;  %v3819_v15 = vrot.slane %v950_v9, %v3796_v45  ;;  %v3822_v16 = vrot.slane %v3033_v10, %v3796_v45 }
 0x1e1   :  { %v738_v19 = vrot.slane %v730_v11, %v3796_v45  ;;  %v745_v20 = vrot.slane %v731_v12, %v3796_v45  ;;  %v427_v21 = vpop.permute.xlu0 %426  ;;  %v433_v22 = vpop.permute.xlu1 %432 }
 0x1e2   :  { %v966_v24 = vcombine.low %v3813_v13, %v3816_v14  ;;  %v982_v25 = vcombine.low %v3819_v15, %v3822_v16  ;;  %v438_v31 = vcombine.low %v3774_v28, %v427_v21  ;;  %v439_v32 = vcombine.high %v3774_v28, %v427_v21 }
 0x1e3   :  { %v762_v26 = vcombine.low %v738_v19, %v754_v17  ;;  %v763_v27 = vcombine.high %v738_v19, %v754_v17  ;;  %v778_v29 = vcombine.low %v745_v20, %v761_v18  ;;  %v779_v30 = vcombine.high %v745_v20, %v761_v18 }
 0x1e4   :  { %v454_v34 = vcombine.low %v421_v6, %v433_v22  ;;  %v455_v35 = vcombine.high %v421_v6, %v433_v22  ;;  %v446_v40 = vrot.slane %v438_v31, %v3796_v45  ;;  %v453_v41 = vrot.slane %v439_v32, %v3796_v45 }
 0x1e5   :  { %v770_v36 = vrot.slane %v762_v26, %v3800_v52  ;;  %v777_v37 = vrot.slane %v763_v27, %v3800_v52  ;;  %v786_v38 = vrot.slane %v778_v29, %v3800_v52  ;;  %v793_v39 = vrot.slane %v779_v30, %v3800_v52  ;;  %v429_v62 = vpop.permute.xlu0 %428  ;;  %v435_v63 = vpop.permute.xlu1 %434 }
 0x1e6   :  { %v462_v42 = vrot.slane %v454_v34, %v3796_v45  ;;  %v469_v43 = vrot.slane %v455_v35, %v3796_v45  ;;  %v506_v8 = vcombine.low %v3763_v23, %v429_v62  ;;  %v507_v9 = vcombine.high %v3763_v23, %v429_v62 }
 0x1e7   :  { %v866_v44 = vcombine.low %v770_v36, %v777_v37  ;;  %v3030_v28 = vcombine.high %v770_v36, %v777_v37  ;;  %v882_v46 = vcombine.low %v786_v38, %v793_v39  ;;  %v3031_v47 = vcombine.high %v786_v38, %v793_v39 }
 0x1e8   :  { %v470_v48 = vcombine.low %v446_v40, %v462_v42  ;;  %v471_v50 = vcombine.high %v446_v40, %v462_v42  ;;  %v486_v51 = vcombine.low %v453_v41, %v469_v43  ;;  %v487_v53 = vcombine.high %v453_v41, %v469_v43 }
 0x1e9   :  { %v873_v54 = vrot.slane %v866_v44, %v3796_v45  ;;  %v881_v55 = vrot.slane %v3030_v28, %v3796_v45  ;;  %v889_v56 = vrot.slane %v882_v46, %v3796_v45  ;;  %v897_v57 = vrot.slane %v3031_v47, %v3796_v45 }
 0x1ea   :  { %v478_v58 = vrot.slane %v470_v48, %v3800_v52  ;;  %v485_v59 = vrot.slane %v471_v50, %v3800_v52  ;;  %v494_v60 = vrot.slane %v486_v51, %v3800_v52  ;;  %v501_v61 = vrot.slane %v487_v53, %v3800_v52 }
 0x1eb   :  { %v898_v0 = vcombine.low %v873_v54, %v881_v55  ;;  %v899_v1 = vcombine.high %v873_v54, %v881_v55  ;;  %v914_v2 = vcombine.low %v889_v56, %v897_v57  ;;  %v915_v3 = vcombine.high %v889_v56, %v897_v57 }
 0x1ec   :  { %v574_v4 = vcombine.low %v478_v58, %v485_v59  ;;  %v3026_v5 = vcombine.high %v478_v58, %v485_v59  ;;  %v590_v6 = vcombine.low %v494_v60, %v501_v61  ;;  %v3027_v7 = vcombine.high %v494_v60, %v501_v61 }
 0x1ed   :  { %v522_v10 = vcombine.low %v3798_v49, %v435_v63  ;;  %v523_v11 = vcombine.high %v3798_v49, %v435_v63  ;;  %v514_v20 = vrot.slane %v506_v8, %v3796_v45  ;;  %v521_v21 = vrot.slane %v507_v9, %v3796_v45 }
 0x1ee   :  { %v581_v12 = vrot.slane %v574_v4, %v3796_v45  ;;  %v589_v17 = vrot.slane %v3026_v5, %v3796_v45  ;;  %v597_v18 = vrot.slane %v590_v6, %v3796_v45  ;;  %v605_v19 = vrot.slane %v3027_v7, %v3796_v45 }
 0x1ef   :  { %v530_v22 = vrot.slane %v522_v10, %v3796_v45  ;;  %v537_v23 = vrot.slane %v523_v11, %v3796_v45  ;;  %v906_v35 = vrot.slane %v898_v0, %v3800_v52  ;;  %v922_v36 = vrot.slane %v914_v2, %v3800_v52 }
 0x1f0   :  { %v606_v26 = vcombine.low %v581_v12, %v589_v17  ;;  %v607_v27 = vcombine.high %v581_v12, %v589_v17  ;;  %v622_v29 = vcombine.low %v597_v18, %v605_v19  ;;  %v623_v49 = vcombine.high %v597_v18, %v605_v19 }
 0x1f1   :  { %v538_v30 = vcombine.low %v514_v20, %v530_v22  ;;  %v539_v31 = vcombine.high %v514_v20, %v530_v22  ;;  %v554_v32 = vcombine.low %v521_v21, %v537_v23  ;;  %v555_v34 = vcombine.high %v521_v21, %v537_v23  ;;  %v3157_v21 = vpop.f32.mrb[2].mxu0  ;;  %v3023_v22 = vld [vmem:[#allocation13] ss:$0 sm:$0xff] }
 0x1f2   :  { %v913_v37 = vrot.slane %v899_v1, %v3800_v52  ;;  %v929_v38 = vrot.slane %v915_v3, %v3800_v52  ;;  %v930_v43 = vcombine.low %v906_v35, %v922_v36  ;;  %v614_v28 = vrot.slane %v606_v26, %v3800_v52  ;;  %v409_v26 = vpop.f32.mrb[3].mxu0 }
 0x1f3   :  { %v546_v39 = vrot.slane %v538_v30, %v3800_v52  ;;  %v553_v40 = vrot.slane %v539_v31, %v3800_v52  ;;  %v562_v41 = vrot.slane %v554_v32, %v3800_v52  ;;  %v569_v42 = vrot.slane %v555_v34, %v3800_v52 }
 0x1f4   :  { %v932_v44 = vcombine.low %v913_v37, %v929_v38  ;;  %v630_v46 = vrot.slane %v622_v29, %v3800_v52  ;;  %3159 = vmatpush3.xpose.msk.msra.mxu1 %vm1294_vm2, %v930_v43  ;;  %v974_v54 = vrot.slane %v966_v24, %v3800_v52  ;;  %v990_v55 = vrot.slane %v982_v25, %v3800_v52 }
 0x1f5   :  { %v642_v47 = vcombine.low %v546_v39, %v553_v40  ;;  %v3028_v48 = vcombine.high %v546_v39, %v553_v40  ;;  %v658_v50 = vcombine.low %v562_v41, %v569_v42  ;;  %v3029_v51 = vcombine.high %v562_v41, %v569_v42  ;;  %3163 = vmatprep.subr.mxu1 %v3555_v33 }
 0x1f6   :  { %3179 = vmatpush3.xpose.msk.msra.mxu0 %vm1294_vm2, %v932_v44  ;;  %v638_v53 = vcombine.low %v614_v28, %v630_v46  ;;  %v998_v60 = vcombine.low %v974_v54, %v990_v55  ;;  %v621_v24 = vrot.slane %v607_v27, %v3800_v52  ;;  %v637_v61 = vrot.slane %v623_v49, %v3800_v52 }
 0x1f7   :  { %v649_v56 = vrot.slane %v642_v47, %v3796_v45  ;;  %v657_v57 = vrot.slane %v3028_v48, %v3796_v45  ;;  %v665_v58 = vrot.slane %v658_v50, %v3796_v45  ;;  %v673_v59 = vrot.slane %v3029_v51, %v3796_v45  ;;  %3188 = vmatprep.subr.mxu0 %v3555_v33 }
 0x1f8   :  { %3161 = vmatmul.mubr.msk.f32.vlgmr.msra.gmra.mrb[2].mxu1 %vm1294_vm2, %v638_v53  ;;  %v640_v25 = vcombine.low %v621_v24, %v637_v61  ;;  %v933_v0 = vcombine.high %v913_v37, %v929_v38  ;;  %v967_v4 = vcombine.high %v3813_v13, %v3816_v14  ;;  %v983_v5 = vcombine.high %v3819_v15, %v3822_v16 }
 0x1f9   :  { %v674_v62 = vcombine.low %v649_v56, %v657_v57  ;;  %v690_v63 = vcombine.low %v665_v58, %v673_v59  ;;  %3164 = vmatpush3.xpose.msk.msra.mxu1 %vm1294_vm2, %v998_v60  ;;  %3165 = vmatprep.mubr.msk.f32.mxu1 %vm3556_vm1, %v3555_v33  ;;  %v931_v6 = vcombine.high %v906_v35, %v922_v36 }
 0x1fa   :  { %3168 = vmatprep.subr.mxu1 %v3555_v33  ;;  %3181 = vmatmul.mubr.msk.f32.vlgmr.msra.gmra.mrb[4].mxu0 %vm1294_vm2, %v640_v25  ;;  %v641_v7 = vcombine.high %v621_v24, %v637_v61  ;;  %v675_v8 = vcombine.high %v649_v56, %v657_v57  ;;  %v691_v9 = vcombine.high %v665_v58, %v673_v59 }
 0x1fb   :  { %v682_v1 = vrot.slane %v674_v62, %v3800_v52  ;;  %v698_v2 = vrot.slane %v690_v63, %v3800_v52  ;;  %3189 = vmatpush3.xpose.msk.msra.mxu0 %vm1294_vm2, %v933_v0  ;;  %3190 = vmatprep.mubr.msk.f32.mxu0 %vm3556_vm1, %v3555_v33  ;;  %v639_v13 = vcombine.high %v614_v28, %v630_v46 }
 0x1fc   :  { %3198 = vmatprep.subr.mxu0 %v3555_v33  ;;  %v999_v14 = vcombine.high %v974_v54, %v990_v55  ;;  %v981_v15 = vrot.slane %v967_v4, %v3800_v52  ;;  %v997_v16 = vrot.slane %v983_v5, %v3800_v52  ;;  %v689_v11 = vrot.slane %v675_v8, %v3800_v52 }
 0x1fd   :  { %v706_v3 = vcombine.low %v682_v1, %v698_v2  ;;  %v707_v10 = vcombine.high %v682_v1, %v698_v2  ;;  %v705_v12 = vrot.slane %v691_v9, %v3800_v52  ;;  %v3936_v23 = vadd.f32 %v3157_v21, %v3023_v22 }
 0x1fe   :  { %3191 = vmatmul.mubr.msk.f32.vlgmr.msra.gmra.mrb[6].mxu0 %vm1294_vm2, %v641_v7  ;;  %v1000_v17 = vcombine.low %v981_v15, %v997_v16  ;;  %v1001_v19 = vcombine.high %v981_v15, %v997_v16  ;;  %v410_v54 = vadd.f32 %v3023_v22, %v409_v26 }
 0x1ff   :  { %3166 = vmatmul.mubr.msk.f32.vlgmr.msra.gmra.mrb[4].mxu1 %vm1294_vm2, %v706_v3  ;;  %3200 = vmatprep.mubr.msk.f32.mxu0 %vm3556_vm1, %v3555_v33  ;;  %v708_v18 = vcombine.low %v689_v11, %v705_v12  ;;  %v709_v20 = vcombine.high %v689_v11, %v705_v12 }
 0x200   :  { %3169 = vmatpush3.xpose.msk.msra.mxu1 %vm1294_vm2, %v931_v6  ;;  %3170 = vmatprep.mubr.msk.f32.mxu1 %vm3556_vm1, %v3555_v33 }
 0x201   :  { %3173 = vmatprep.subr.mxu1 %v3555_v33 }
 0x203   :  { %3171 = vmatmul.mubr.msk.f32.vlgmr.msra.gmra.mrb[6].mxu1 %vm1294_vm2, %v639_v13 }
 0x204   :  { %3174 = vmatpush3.xpose.msk.msra.mxu1 %vm1294_vm2, %v999_v14  ;;  %3175 = vmatprep.mubr.msk.f32.mxu1 %vm3556_vm1, %v3555_v33 }
 0x205   :  { %3183 = vmatprep.subr.mxu1 %v3555_v33 }
 0x207   :  { %3176 = vmatmul.mubr.msk.f32.vlgmr.msra.gmra.mrb[8].mxu1 %vm1294_vm2, %v707_v10 }
 0x208   :  { %3184 = vmatpush3.xpose.msk.msra.mxu1 %vm1294_vm2, %v1000_v17  ;;  %3185 = vmatprep.mubr.msk.f32.mxu1 %vm3556_vm1, %v3555_v33 }
 0x209   :  { %3193 = vmatprep.subr.mxu1 %v3555_v33 }
 0x20b   :  { %3186 = vmatmul.mubr.msk.f32.vlgmr.msra.gmra.mrb[10].mxu1 %vm1294_vm2, %v708_v18 }
 0x20c   :  { %3194 = vmatpush3.xpose.msk.msra.mxu1 %vm1294_vm2, %v1001_v19  ;;  %3195 = vmatprep.mubr.msk.f32.mxu1 %vm3556_vm1, %v3555_v33 }
 0x20d   :  { %3203 = vmatprep.subr.mxu1 %v3555_v33 }
 0x20f   :  { %3196 = vmatmul.mubr.msk.f32.vlgmr.msra.gmra.mrb[12].mxu1 %vm1294_vm2, %v709_v20 }
 0x210   :  { %3205 = vmatprep.mubr.msk.f32.mxu1 %vm3556_vm1, %v3555_v33 }
 0x2cb   :  { %v1367_v27 = vpop.f32.mrb[2].mxu1 }
 0x2cc   :  { %v3162_v29 = vpop.f32.mrb[3].mxu1  ;;  %v1903_v49 = vsel %vm1294_vm2, %v1367_v27, -inf }
 0x2cd   :  { %1904 = vmax.xlane.f32.xlu0 %v1903_v49  ;;  %v1671_v30 = vpop.f32.mrb[4].mxu0 }
 0x2ce   :  { %v3182_v31 = vpop.f32.mrb[5].mxu0  ;;  %v1915_v40 = vsel %vm1294_vm2, %v1671_v30, -inf }
 0x2d1   :  { %v1823_v34 = vpop.f32.mrb[6].mxu0 }
 0x2d2   :  { %v1443_v32 = vpop.f32.mrb[4].mxu1  ;;  %v3192_v37 = vpop.f32.mrb[7].mxu0  ;;  %v1921_v44 = vsel %vm1294_vm2, %v1823_v34, -inf }
 0x2d3   :  { %v3167_v35 = vpop.f32.mrb[5].mxu1  ;;  %v1906_v36 = vsel %vm1294_vm2, %v1443_v32, -inf }
 0x2d4   :  { %1907 = vmax.xlane.f32.xlu1 %v1906_v36 }
 0x2d6   :  { %v1519_v38 = vpop.f32.mrb[6].mxu1 }
 0x2d7   :  { %v3172_v39 = vpop.f32.mrb[7].mxu1  ;;  %v1909_v41 = vsel %vm1294_vm2, %v1519_v38, -inf }
 0x2d8   :  { %1916 = vmax.xlane.f32.xlu1 %v1915_v40  ;;  %1910 = vmax.xlane.f32.xlu0 %v1909_v41 }
 0x2da   :  { %v3942_v42 = vpop.f32.mrb[8].mxu1 }
 0x2db   :  { %v3177_v43 = vpop.f32.mrb[9].mxu1  ;;  %v1912_v28 = vsel %vm1294_vm2, %v3942_v42, -inf }
 0x2dc   :  { %1922 = vmax.xlane.f32.xlu1 %v1921_v44  ;;  %1913 = vmax.xlane.f32.xlu0 %v1912_v28 }
 0x2de   :  { %v3947_v46 = vpop.f32.mrb[10].mxu1 }
 0x2df   :  { %v3187_v47 = vpop.f32.mrb[11].mxu1  ;;  %v1918_v48 = vsel %vm1294_vm2, %v3947_v46, -inf }
 0x2e0   :  { %1919 = vmax.xlane.f32.xlu0 %v1918_v48 }
 0x2e2   :  { %v1899_v50 = vpop.f32.mrb[12].mxu1 }
 0x2e3   :  { %v3197_v51 = vpop.f32.mrb[13].mxu1  ;;  %v1924_v53 = vsel %vm1294_vm2, %v1899_v50, -inf }
 0x2e4   :  { %1925 = vmax.xlane.f32.xlu0 %v1924_v53 }
 0x2ed   :  { %1004 = vrot.lane.b32.xlu1 %v410_v54, %s3553_s30 }
 0x2f1   :  { %1016 = vrot.lane.b32.xlu1 %v410_v54, %s3554_s6 }
 0x2fa   :  { %1010 = vrot.lane.b32.xlu0 %v410_v54, %s3552_s7 }
 0x35a   :  { %v1905_v55 = vpop.xlane.xlu0 %1904 }
 0x35b   :  { %v1927_v56 = vsub.f32 %v1367_v27, %v1905_v55 }
 0x35d   :  { %v1935_v57 = vmul.f32 1.442695, %v1927_v56 }
 0x35f   :  { %3301 = vpow2.f32 %v1935_v57 }
 0x361   :  { %v1908_v58 = vpop.xlane.xlu1 %1907 }
 0x362   :  { %v1928_v59 = vsub.f32 %v1443_v32, %v1908_v58 }
 0x364   :  { %v1937_v60 = vmul.f32 1.442695, %v1928_v59 }
 0x365   :  { %v1917_v24 = vpop.xlane.xlu1 %1916  ;;  %v1911_v61 = vpop.xlane.xlu0 %1910 }
 0x366   :  { %3303 = vpow2.f32 %v1937_v60  ;;  %v1931_v62 = vsub.f32 %v1671_v30, %v1917_v24  ;;  %v1929_v63 = vsub.f32 %v1519_v38, %v1911_v61 }
 0x368   :  { %v1943_v25 = vmul.f32 1.442695, %v1931_v62  ;;  %v1939_v0 = vmul.f32 1.442695, %v1929_v63 }
 0x369   :  { %v1923_v1 = vpop.xlane.xlu1 %1922  ;;  %v3955_v2 = vpop.xlane.xlu0 %1913 }
 0x36a   :  { %v3957_v3 = vpop.eup %3301  ;;  %v1933_v4 = vsub.f32 %v1823_v34, %v1923_v1  ;;  %3305 = vpow2.f32 %v1939_v0 }
 0x36b   :  { %v1951_v5 = vsel %vm1294_vm2, %v3957_v3, 0.0  ;;  %3307 = vpow2.f32 %v1943_v25 }
 0x36c   :  { %v1947_v6 = vmul.f32 1.442695, %v1933_v4  ;;  %1952 = vadd.xlane.f32.xlu1 %v1951_v5  ;;  %v1930_v4 = vsub.f32 %v3942_v42, %v3955_v2 }
 0x36d   :  { %v3961_v7 = vpop.xlane.xlu0 %1919  ;;  %v1005_v8 = vpop.permute.xlu1 %1004 }
 0x36e   :  { %3309 = vpow2.f32 %v1947_v6  ;;  %v1941_v5 = vmul.f32 1.442695, %v1930_v4  ;;  %v1932_v6 = vsub.f32 %v3947_v46, %v3961_v7 }
 0x370   :  { %v3963_v9 = vpop.eup %3303 }
 0x371   :  { %v1926_v13 = vpop.xlane.xlu0 %1925  ;;  %v1954_v14 = vsel %vm1294_vm2, %v3963_v9, 0.0  ;;  %v1017_v15 = vpop.permute.xlu1 %1016 }
 0x372   :  { %v1934_v16 = vsub.f32 %v1899_v50, %v1926_v13  ;;  %1955 = vadd.xlane.f32.xlu0 %v1954_v14  ;;  %v1038_v10 = vcombine.low %v1005_v8, %v1017_v15  ;;  %v1039_v11 = vcombine.high %v1005_v8, %v1017_v15  ;;  %v1945_v8 = vmul.f32 1.442695, %v1932_v6 }
 0x374   :  { %v1949_v12 = vmul.f32 1.442695, %v1934_v16  ;;  %v3967_v17 = vpop.eup %3305  ;;  %v1046_v18 = vrot.slane %v1038_v10, %v3796_v45  ;;  %v1053_v19 = vrot.slane %v1039_v11, %v3796_v45 }
 0x375   :  { %v1011_v20 = vpop.permute.xlu0 %1010  ;;  %v3971_v21 = vpop.eup %3307  ;;  %v1957_v27 = vsel %vm1294_vm2, %v3967_v17, 0.0 }
 0x376   :  { %3311 = vpow2.f32 %v1949_v12  ;;  %v1022_v22 = vcombine.low %v410_v54, %v1011_v20  ;;  %v1023_v26 = vcombine.high %v410_v54, %v1011_v20  ;;  %1958 = vadd.xlane.f32.xlu1 %v1957_v27  ;;  %v1963_v30 = vsel %vm1294_vm2, %v3971_v21, 0.0 }
 0x377   :  { %3313 = vpow2.f32 %v1941_v5 }
 0x378   :  { %v1030_v29 = vrot.slane %v1022_v22, %v3796_v45  ;;  %v1037_v49 = vrot.slane %v1023_v26, %v3796_v45  ;;  %v3979_v31 = vpop.eup %3309  ;;  %3315 = vpow2.f32 %v1945_v8 }
 0x379   :  { %v1969_v41 = vsel %vm1294_vm2, %v3979_v31, 0.0 }
 0x37a   :  { %v1054_v32 = vcombine.low %v1030_v29, %v1046_v18  ;;  %v1055_v34 = vcombine.high %v1030_v29, %v1046_v18  ;;  %v1070_v35 = vcombine.low %v1037_v49, %v1053_v19  ;;  %v1071_v36 = vcombine.high %v1037_v49, %v1053_v19  ;;  %1964 = vadd.xlane.f32.xlu1 %v1963_v30 }
 0x37c   :  { %v1062_v37 = vrot.slane %v1054_v32, %v3800_v52  ;;  %v1069_v38 = vrot.slane %v1055_v34, %v3800_v52  ;;  %v1078_v39 = vrot.slane %v1070_v35, %v3800_v52  ;;  %v1085_v40 = vrot.slane %v1071_v36, %v3800_v52 }
 0x37e   :  { %v1158_v43 = vcombine.low %v1062_v37, %v1069_v38  ;;  %v3034_v44 = vcombine.high %v1062_v37, %v1069_v38  ;;  %v1174_v28 = vcombine.low %v1078_v39, %v1085_v40  ;;  %v3035_v47 = vcombine.high %v1078_v39, %v1085_v40  ;;  %1970 = vadd.xlane.f32.xlu1 %v1969_v41 }
 0x380   :  { %v3987_v48 = vpop.eup %3311  ;;  %v1165_v50 = vrot.slane %v1158_v43, %v3796_v45  ;;  %v1173_v51 = vrot.slane %v3034_v44, %v3796_v45  ;;  %v1181_v53 = vrot.slane %v1174_v28, %v3796_v45  ;;  %v1189_v54 = vrot.slane %v3035_v47, %v3796_v45 }
 0x381   :  { %v1972_v55 = vsel %vm1294_vm2, %v3987_v48, 0.0  ;;  %v4018_v13 = vpop.eup %3313 }
 0x382   :  { %v1190_v56 = vcombine.low %v1165_v50, %v1173_v51  ;;  %v1206_v57 = vcombine.low %v1181_v53, %v1189_v54  ;;  %v1191_v58 = vcombine.high %v1165_v50, %v1173_v51  ;;  %v1207_v59 = vcombine.high %v1181_v53, %v1189_v54  ;;  %1973 = vadd.xlane.f32.xlu1 %v1972_v55  ;;  %v4022_v15 = vpop.eup %3315 }
 0x383   :  { %v1960_v14 = vsel %vm1294_vm2, %v4018_v13, 0.0  ;;  %v1966_v16 = vsel %vm1294_vm2, %v4022_v15, 0.0 }
 0x384   :  { %v1198_v60 = vrot.slane %v1190_v56, %v3800_v52  ;;  %v1214_v24 = vrot.slane %v1206_v57, %v3800_v52  ;;  %v3998_v61 = vrot.slane %v1191_v58, %v3800_v52  ;;  %v4001_v62 = vrot.slane %v1207_v59, %v3800_v52 }
 0x386   :  { %v1222_v63 = vcombine.low %v1198_v60, %v1214_v24  ;;  %v1223_v25 = vcombine.high %v1198_v60, %v1214_v24  ;;  %v1224_v0 = vcombine.low %v3998_v61, %v4001_v62  ;;  %v1225_v1 = vcombine.high %v3998_v61, %v4001_v62 }
 0x388   :  { %1006 = vrot.lane.b32.xlu0 %v3936_v23, %s3553_s30  ;;  %3199 = vmatpush3.msra.mxu0 %v1222_v63 }
 0x389   :  { %3208 = vmatprep.subr.mxu0 %v3555_v33 }
 0x38c   :  { %1012 = vrot.lane.b32.xlu0 %v3936_v23, %s3552_s7 }
 0x390   :  { %1018 = vrot.lane.b32.xlu0 %v3936_v23, %s3554_s6 }
 0x3af   :  { %1961 = vadd.xlane.f32.xlu0 %v1960_v14 }
 0x3b3   :  { %1967 = vadd.xlane.f32.xlu0 %v1966_v16 }
 0x3f9   :  { %v1953_v42 = vpop.xlane.xlu1 %1952 }
 0x3fa   :  { %3317 = vrcp.f32 %v1953_v42 }
 0x3ff   :  { %v1956_v2 = vpop.xlane.xlu0 %1955 }
 0x400   :  { %3319 = vrcp.f32 %v1956_v2 }
 0x403   :  { %v1007_v46 = vpop.permute.xlu0 %1006  ;;  %v1959_v10 = vpop.xlane.xlu1 %1958 }
 0x404   :  { %v3318_v7 = vpop.eup %3317  ;;  %3321 = vrcp.f32 %v1959_v10 }
 0x405   :  { %v1983_v11 = vmul.f32 %v3318_v7, %v3957_v3 }
 0x407   :  { %1991 = vst.msk [vmem:[#allocation15] sm:$0xff] %vm1294_vm2, %v1983_v11  ;;  %v1013_v12 = vpop.permute.xlu0 %1012  ;;  %3201 = vmatmul.mubr.msk.f32.vlgmr.msra.gmra.mrb[8].mxu0 %vm1294_vm2, %v1983_v11  ;;  %v1965_v18 = vpop.xlane.xlu1 %1964 }
 0x408   :  { %3209 = vmatpush3.msra.mxu0 %v1223_v25  ;;  %3210 = vmatprep.mubr.msk.f32.mxu0 %vm3556_vm1, %v3555_v33  ;;  %3323 = vrcp.f32 %v1965_v18  ;;  %v1090_v20 = vcombine.low %v3936_v23, %v1013_v12  ;;  %v1091_v22 = vcombine.high %v3936_v23, %v1013_v12 }
 0x409   :  { %3218 = vmatprep.subr.mxu0 %v3555_v33 }
 0x40a   :  { %v3320_v19 = vpop.eup %3319  ;;  %v1098_v30 = vrot.slane %v1090_v20, %v3796_v45  ;;  %v1105_v32 = vrot.slane %v1091_v22, %v3796_v45 }
 0x40b   :  { %v1984_v3 = vmul.f32 %v3320_v19, %v3963_v9  ;;  %v1019_v26 = vpop.permute.xlu0 %1018  ;;  %v1971_v27 = vpop.xlane.xlu1 %1970 }
 0x40c   :  { %v1106_v29 = vcombine.low %v1007_v46, %v1019_v26  ;;  %v1107_v49 = vcombine.high %v1007_v46, %v1019_v26  ;;  %3325 = vrcp.f32 %v1971_v27 }
 0x40d   :  { %1995 = vst.msk [vmem:[#allocation15 + $0x20] sm:$0xff] %vm1294_vm2, %v1984_v3 }
 0x40e   :  { %v1114_v34 = vrot.slane %v1106_v29, %v3796_v45  ;;  %v1121_v35 = vrot.slane %v1107_v49, %v3796_v45  ;;  %v3322_v36 = vpop.eup %3321 }
 0x40f   :  { %v1985_v23 = vmul.f32 %v3322_v36, %v3967_v17  ;;  %v1974_v39 = vpop.xlane.xlu1 %1973 }
 0x410   :  { %v1122_v37 = vcombine.low %v1098_v30, %v1114_v34  ;;  %v1123_v9 = vcombine.high %v1098_v30, %v1114_v34  ;;  %v1138_v38 = vcombine.low %v1105_v32, %v1121_v35  ;;  %v1139_v40 = vcombine.high %v1105_v32, %v1121_v35 }
 0x411   :  { %3327 = vrcp.f32 %v1974_v39  ;;  %1992 = vst.msk [vmem:[#allocation15 + $0x8] sm:$0xff] %vm1294_vm2, %v1985_v23  ;;  %3211 = vmatmul.mubr.msk.f32.vlgmr.msra.gmra.mrb[10].mxu0 %vm1294_vm2, %v1985_v23 }
 0x412   :  { %v1130_v41 = vrot.slane %v1122_v37, %v3800_v52  ;;  %v1137_v43 = vrot.slane %v1123_v9, %v3800_v52  ;;  %v1146_v44 = vrot.slane %v1138_v38, %v3800_v52  ;;  %v3324_v28 = vpop.eup %3323  ;;  %v1153_v47 = vrot.slane %v1139_v40, %v3800_v52  ;;  %3219 = vmatpush3.msra.mxu0 %v1224_v0 }
 0x413   :  { %3220 = vmatprep.mubr.msk.f32.mxu0 %vm3556_vm1, %v3555_v33  ;;  %v1987_v17 = vmul.f32 %v3324_v28, %v3971_v21  ;;  %3228 = vmatprep.subr.mxu0 %v3555_v33 }
 0x414   :  { %v1226_v50 = vcombine.low %v1130_v41, %v1137_v43  ;;  %v3036_v51 = vcombine.high %v1130_v41, %v1137_v43  ;;  %v1242_v53 = vcombine.low %v1146_v44, %v1153_v47  ;;  %v3037_v54 = vcombine.high %v1146_v44, %v1153_v47  ;;  %v2887_v47 = vld [vmem:[%s4198_s9] sm:$0xff] }
 0x415   :  { %1993 = vst.msk [vmem:[#allocation15 + $0x10] sm:$0xff] %vm1294_vm2, %v1987_v17  ;;  %3221 = vmatmul.mubr.msk.f32.vlgmr.msra.gmra.mrb[12].mxu0 %vm1294_vm2, %v1987_v17  ;;  %v2888_v17 = vld [vmem:[%s4198_s9 + $0x8] sm:$0xff] }
 0x416   :  { %v1233_v55 = vrot.slane %v1226_v50, %v3796_v45  ;;  %v1241_v56 = vrot.slane %v3036_v51, %v3796_v45  ;;  %v3326_v57 = vpop.eup %3325  ;;  %v1249_v58 = vrot.slane %v1242_v53, %v3796_v45  ;;  %v1257_v59 = vrot.slane %v3037_v54, %v3796_v45  ;;  %3229 = vmatpush3.msra.mxu0 %v1225_v1 }
 0x417   :  { %3230 = vmatprep.mubr.msk.f32.mxu0 %vm3556_vm1, %v3555_v33  ;;  %v1989_v21 = vmul.f32 %v3326_v57, %v3979_v31 }
 0x418   :  { %v1258_v60 = vcombine.low %v1233_v55, %v1241_v56  ;;  %v1274_v24 = vcombine.low %v1249_v58, %v1257_v59  ;;  %v1275_v5 = vcombine.high %v1249_v58, %v1257_v59 }
 0x419   :  { %1994 = vst.msk [vmem:[#allocation15 + $0x18] sm:$0xff] %vm1294_vm2, %v1989_v21  ;;  %3231 = vmatmul.mubr.msk.f32.vlgmr.msra.gmra.mrb[14].mxu0 %vm1294_vm2, %v1989_v21 }
 0x41a   :  { %v1266_v63 = vrot.slane %v1258_v60, %v3800_v52  ;;  %v1282_v0 = vrot.slane %v1274_v24, %v3800_v52  ;;  %v1289_v8 = vrot.slane %v1275_v5, %v3800_v52 }
 0x41b   :  { %v3328_v25 = vpop.eup %3327 }
 0x41c   :  { %v1990_v4 = vmul.f32 %v3328_v25, %v3987_v48  ;;  %v1290_v61 = vcombine.low %v1266_v63, %v1282_v0  ;;  %v1291_v62 = vcombine.high %v1266_v63, %v1282_v0  ;;  %v1259_v48 = vcombine.high %v1233_v55, %v1241_v56 }
 0x41d   :  { %v3273_v55 = vpack.c.bf16 %v2888_v17, %v2887_v47 }
 0x41e   :  { %1998 = vst.msk [vmem:[#allocation15 + $0x38] sm:$0xff] %vm1294_vm2, %v1990_v4  ;;  %3204 = vmatpush3.msra.mxu1 %v1290_v61  ;;  %v1273_v6 = vrot.slane %v1259_v48, %v3800_v52 }
 0x41f   :  { %3206 = vmatmul.mubr.msk.f32.vlgmr.msra.gmra.mrb[14].mxu1 %vm1294_vm2, %v1984_v3  ;;  %3213 = vmatprep.subr.mxu1 %v3555_v33 }
 0x420   :  { %3214 = vmatpush3.msra.mxu1 %v1291_v62  ;;  %3215 = vmatprep.mubr.msk.f32.mxu1 %vm3556_vm1, %v3555_v33  ;;  %v1292_v42 = vcombine.low %v1273_v6, %v1289_v8  ;;  %v1293_v7 = vcombine.high %v1273_v6, %v1289_v8 }
 0x421   :  { %3223 = vmatprep.subr.mxu1 %v3555_v33  ;;  %3274 = vmatprep.subr.bf16.mxu0 %v3273_v55 }
 0x422   :  { %3276 = vmatpush3.bf16.msra.mxu0 %v3273_v55 }
 0x43c   :  { %v1962_v31 = vpop.xlane.xlu0 %1961 }
 0x43d   :  { %3329 = vrcp.f32 %v1962_v31 }
 0x440   :  { %v1968_v1 = vpop.xlane.xlu0 %1967 }
 0x441   :  { %3331 = vrcp.f32 %v1968_v1 }
 0x447   :  { %v3330_v14 = vpop.eup %3329 }
 0x448   :  { %v1986_v16 = vmul.f32 %v3330_v14, %v4018_v13 }
 0x44a   :  { %1996 = vst.msk [vmem:[#allocation15 + $0x28] sm:$0xff] %vm1294_vm2, %v1986_v16  ;;  %3216 = vmatmul.mubr.msk.f32.vlgmr.msra.gmra.mrb[16].mxu1 %vm1294_vm2, %v1986_v16 }
 0x44b   :  { %v3332_v2 = vpop.eup %3331  ;;  %3224 = vmatpush3.msra.mxu1 %v1292_v42  ;;  %3225 = vmatprep.mubr.msk.f32.mxu1 %vm3556_vm1, %v3555_v33 }
 0x44c   :  { %v1988_v46 = vmul.f32 %v3332_v2, %v4022_v15  ;;  %3233 = vmatprep.subr.mxu1 %v3555_v33 }
 0x44e   :  { %1997 = vst.msk [vmem:[#allocation15 + $0x30] sm:$0xff] %vm1294_vm2, %v1988_v46  ;;  %3226 = vmatmul.mubr.msk.f32.vlgmr.msra.gmra.mrb[18].mxu1 %vm1294_vm2, %v1988_v46 }
 0x44f   :  { %3234 = vmatpush3.msra.mxu1 %v1293_v7  ;;  %3235 = vmatprep.mubr.msk.f32.mxu1 %vm3556_vm1, %v3555_v33 }
 0x452   :  { %3236 = vmatmul.mubr.msk.f32.vlgmr.msra.gmra.mrb[20].mxu1 %vm1294_vm2, %v1990_v4 }
 0x4da   :  { %v2068_v13 = vpop.f32.mrb[8].mxu0 }
 0x4db   :  { %v3202_v10 = vpop.f32.mrb[9].mxu0 }
 0x4e4   :  { %v2214_v11 = vpop.f32.mrb[10].mxu0 }
 0x4e5   :  { %v3212_v12 = vpop.f32.mrb[11].mxu0 }
 0x4e8   :  { %v2360_v18 = vpop.f32.mrb[12].mxu0 }
 0x4e9   :  { %v2583_v19 = vcombine.low %v2068_v13, %v2360_v18  ;;  %v2584_v15 = vcombine.high %v2068_v13, %v2360_v18  ;;  %v3222_v20 = vpop.f32.mrb[13].mxu0 }
 0x4eb   :  { %v2591_v29 = vrot.slane %v2583_v19, %v3796_v45  ;;  %v2598_v49 = vrot.slane %v2584_v15, %v3796_v45  ;;  %v2889_v19 = vld [vmem:[%s4198_s9 + $0x10] sm:$0xff]  ;;  %v2890_v15 = vld [vmem:[%s4198_s9 + $0x18] sm:$0xff]  ;;  %s3560_s9 = smov 24  }
 0x4ec   :  { %v2506_v22 = vpop.f32.mrb[14].mxu0 }
 0x4ed   :  { %v2599_v3 = vcombine.low %v2214_v11, %v2506_v22  ;;  %v2600_v26 = vcombine.high %v2214_v11, %v2506_v22  ;;  %v3232_v27 = vpop.f32.mrb[15].mxu0 }
 0x4ee   :  { %v3277_v27 = vpack.c.bf16 %v2890_v15, %v2889_v19 }
 0x4ef   :  { %v2607_v33 = vrot.slane %v2599_v3, %v3796_v45  ;;  %v2614_v30 = vrot.slane %v2600_v26, %v3796_v45 }
 0x4f0   :  { %3278 = vmatprep.subr.bf16.mxu0 %v3277_v27 }
 0x4f1   :  { %v2615_v32 = vcombine.low %v2591_v29, %v2607_v33  ;;  %v2616_v34 = vcombine.high %v2591_v29, %v2607_v33  ;;  %v2631_v35 = vcombine.low %v2598_v49, %v2614_v30  ;;  %v2632_v36 = vcombine.high %v2598_v49, %v2614_v30  ;;  %3280 = vmatpush3.bf16.msra.mxu0 %v3277_v27 }
 0x4f2   :  { %v2141_v23 = vpop.f32.mrb[14].mxu1 }
 0x4f3   :  { %v2623_v37 = vrot.slane %v2615_v32, %v3800_v52  ;;  %v2630_v9 = vrot.slane %v2616_v34, %v3800_v52  ;;  %v2639_v38 = vrot.slane %v2631_v35, %v3800_v52  ;;  %v2646_v39 = vrot.slane %v2632_v36, %v3800_v52  ;;  %v3207_v40 = vpop.f32.mrb[15].mxu1 }
 0x4f5   :  { %v2719_v41 = vcombine.low %v2623_v37, %v2630_v9  ;;  %v3062_v43 = vcombine.high %v2623_v37, %v2630_v9  ;;  %v2735_v44 = vcombine.low %v2639_v38, %v2646_v39  ;;  %v3063_v28 = vcombine.high %v2639_v38, %v2646_v39 }
 0x4f7   :  { %v2726_v50 = vrot.slane %v2719_v41, %v3796_v45  ;;  %v2734_v51 = vrot.slane %v3062_v43, %v3796_v45  ;;  %v2742_v53 = vrot.slane %v2735_v44, %v3796_v45  ;;  %v2750_v54 = vrot.slane %v3063_v28, %v3796_v45 }
 0x4f9   :  { %v2751_v56 = vcombine.low %v2726_v50, %v2734_v51  ;;  %v2767_v57 = vcombine.low %v2742_v53, %v2750_v54  ;;  %v2752_v58 = vcombine.high %v2726_v50, %v2734_v51  ;;  %v2768_v59 = vcombine.high %v2742_v53, %v2750_v54 }
 0x4fb   :  { %v4110_v21 = vrot.slane %v2751_v56, %v3800_v52  ;;  %v4113_v60 = vrot.slane %v2767_v57, %v3800_v52  ;;  %v2766_v24 = vrot.slane %v2752_v58, %v3800_v52  ;;  %v2782_v63 = vrot.slane %v2768_v59, %v3800_v52 }
 0x4fd   :  { %v2784_v25 = vcombine.high %v4110_v21, %v4113_v60  ;;  %v2783_v0 = vcombine.low %v4110_v21, %v4113_v60  ;;  %v2785_v4 = vcombine.low %v2766_v24, %v2782_v63  ;;  %v2786_v61 = vcombine.high %v2766_v24, %v2782_v63 }
 0x4ff   :  { %2857 = vrot.lane.b32.xlu1 %v2784_v25, %s3546_s16 }
 0x503   :  { %2865 = vrot.lane.b32.xlu1 %v2785_v4, %s3559_s20 }
 0x51d   :  { %v2287_v62 = vpop.f32.mrb[16].mxu1 }
 0x51e   :  { %v3217_v31 = vpop.f32.mrb[17].mxu1 }
 0x521   :  { %v2433_v1 = vpop.f32.mrb[18].mxu1 }
 0x522   :  { %v2651_v48 = vcombine.low %v2141_v23, %v2433_v1  ;;  %v2652_v5 = vcombine.high %v2141_v23, %v2433_v1  ;;  %v3227_v6 = vpop.f32.mrb[19].mxu1 }
 0x524   :  { %v2659_v2 = vrot.slane %v2651_v48, %v3796_v45  ;;  %v2666_v46 = vrot.slane %v2652_v5, %v3796_v45 }
 0x525   :  { %v2579_v8 = vpop.f32.mrb[20].mxu1 }
 0x526   :  { %v2667_v14 = vcombine.low %v2287_v62, %v2579_v8  ;;  %v2668_v16 = vcombine.high %v2287_v62, %v2579_v8  ;;  %v3237_v42 = vpop.f32.mrb[21].mxu1 }
 0x528   :  { %v2675_v7 = vrot.slane %v2667_v14, %v3796_v45  ;;  %v2682_v13 = vrot.slane %v2668_v16, %v3796_v45 }
 0x52a   :  { %v2683_v10 = vcombine.low %v2659_v2, %v2675_v7  ;;  %v2684_v11 = vcombine.high %v2659_v2, %v2675_v7  ;;  %v2699_v12 = vcombine.low %v2666_v46, %v2682_v13  ;;  %v2700_v18 = vcombine.high %v2666_v46, %v2682_v13 }
 0x52c   :  { %v2691_v20 = vrot.slane %v2683_v10, %v3800_v52  ;;  %v2698_v22 = vrot.slane %v2684_v11, %v3800_v52  ;;  %v2707_v3 = vrot.slane %v2699_v12, %v3800_v52  ;;  %v2714_v26 = vrot.slane %v2700_v18, %v3800_v52 }
 0x52e   :  { %v2787_v29 = vcombine.low %v2691_v20, %v2698_v22  ;;  %v3064_v49 = vcombine.high %v2691_v20, %v2698_v22  ;;  %v2803_v33 = vcombine.low %v2707_v3, %v2714_v26  ;;  %v3065_v30 = vcombine.high %v2707_v3, %v2714_v26 }
 0x530   :  { %v2794_v32 = vrot.slane %v2787_v29, %v3796_v45  ;;  %v2802_v34 = vrot.slane %v3064_v49, %v3796_v45  ;;  %v2810_v35 = vrot.slane %v2803_v33, %v3796_v45  ;;  %v2818_v36 = vrot.slane %v3065_v30, %v3796_v45 }
 0x532   :  { %v2820_v23 = vcombine.high %v2794_v32, %v2802_v34  ;;  %v2836_v37 = vcombine.high %v2810_v35, %v2818_v36  ;;  %v2819_v9 = vcombine.low %v2794_v32, %v2802_v34  ;;  %v2835_v38 = vcombine.low %v2810_v35, %v2818_v36 }
 0x534   :  { %v2834_v39 = vrot.slane %v2820_v23, %v3800_v52  ;;  %v2850_v40 = vrot.slane %v2836_v37, %v3800_v52  ;;  %v2827_v41 = vrot.slane %v2819_v9, %v3800_v52  ;;  %v2843_v43 = vrot.slane %v2835_v38, %v3800_v52 }
 0x536   :  { %v2853_v44 = vcombine.low %v2834_v39, %v2850_v40  ;;  %v2852_v28 = vcombine.high %v2827_v41, %v2843_v43  ;;  %v2851_v47 = vcombine.low %v2827_v41, %v2843_v43  ;;  %v2854_v17 = vcombine.high %v2834_v39, %v2850_v40 }
 0x538   :  { %2867 = vrot.lane.b32.xlu1 %v2853_v44, %s3559_s20  ;;  %2859 = vrot.lane.b32.xlu0 %v2852_v28, %s3546_s16 }
 0x53c   :  { %2875 = vrot.lane.b32.xlu1 %v2854_v17, %s3560_s9  ;;  %2873 = vrot.lane.b32.xlu0 %v2786_v61, %s3560_s9 }
 0x571   :  { %v2858_v45 = vpop.permute.xlu1 %2857 }
 0x572   :  { %v2879_v52 = vsel %vm1294_vm2, %v2783_v0, %v2858_v45 }
 0x575   :  { %v2866_v50 = vpop.permute.xlu1 %2865 }
 0x576   :  { %v2882_v55 = vsel %vm2881_vm3, %v2879_v52, %v2866_v50 }
 0x5aa   :  { %v2868_v51 = vpop.permute.xlu1 %2867  ;;  %v2860_v53 = vpop.permute.xlu0 %2859 }
 0x5ab   :  { %v2880_v54 = vsel %vm1294_vm2, %v2851_v47, %v2860_v53 }
 0x5ac   :  { %v2883_v57 = vsel %vm2881_vm3, %v2880_v54, %v2868_v51 }
 0x5ae   :  { %v2876_v56 = vpop.permute.xlu1 %2875  ;;  %v2874_v58 = vpop.permute.xlu0 %2873 }
 0x5af   :  { %v2886_v59 = vsel %vm2884_vm4, %v2883_v57, %v2876_v56  ;;  %v2885_v24 = vsel %vm2884_vm4, %v2882_v55, %v2874_v58 }
 0x5b0   :  { %3246 = vmatprep.mubr.msk.f32.mxu0 %vm152_vm0, %v2885_v24 }
 0x5b1   :  { %3247 = vmatmul.mubr.msk.f32.vlgmr.msra.gmra.mrb[16].mxu0 %vm152_vm0, %v2886_v59 }
 0x5b2   :  { %3498 = shalt.err (!%p3495_p4)
}
 0x5b3   :  { %s3499_s22 = scalar_lea.hbm %s4201_s12, 1024 }
 0x5b4   :  { %p3500_p5 = scmp.ne.s32.totalorder %s4201_s12, %s3499_s22  ;;  %p3503_p6 = scmp.lt.u32.totalorder %s3499_s22, %s4201_s12 }
 0x5b6   :  { %p3505_p7 = pnand %p3503_p6, %p3500_p5 }
 0x5b8   :  { %3508 = shalt.err (!%p3505_p7)
}
 0x5b9   :  { %3004 = dma.vmem_to_hbm [thread:$0]  %s2999_s28, 1024, %s4201_s12, [#allocation16], %s3545_s15, %s3545_s15, %s3546_s16  }
 0x5ba   :  { %v3066_v21 = vld [vmem:[%s4199_s10] ss:$0 sm:$0xff]  ;;  %s3562_s30 = smov [#allocation14]  }
 0x5bb   :  { %s2986_s6 = sshll.u32 %s3562_s30, 4  ;;  %s2987_s6 = int_to_ptr.vmem [resolvable:$true] %s2986_s6 }
 0x5bc   :  { %s3509_s4 = scalar_lea.vmem %s2987_s6, 256  ;;  %p3514_p9 = scmp.lt.s32.totalorder %s2987_s6, %s2987_s6 }
 0x5bd   :  { %p3510_p8 = scmp.ne.s32.totalorder %s2987_s6, %s3509_s4  ;;  %p3515_p10 = scmp.lt.s32.totalorder %s3509_s4, %s3509_s4 }
 0x5bf   :  { %p3516_p11 = por %p3515_p10, %p3514_p9 }
 0x5c1   :  { %p3517_p12 = pnand %p3516_p11, %p3510_p8 }
 0x684   :  { %v3248_v60 = vpop.f32.mrb[16].mxu0 }
 0x685   :  { %v2976_v63 = vadd.f32 %v3248_v60, %v3066_v21  ;;  %v2970_v25 = vpop.f32.mrb[17].mxu0 }
 0x686   :  { %v2971_v0 = vadd.f32 %v3066_v21, %v2970_v25 }
 0x687   :  { %2980 = vst.msk [vmem:[#allocation14 + $0x8] sm:$0xff] %vm152_vm0, %v2976_v63 }
 0x688   :  { %2979 = vst.msk [vmem:[#allocation14] sm:$0xff] %vm152_vm0, %v2971_v0 }
 0x689   :  { %3520 = shalt.err (!%p3517_p12)
}
 0x68a   :  { %s3521_s19 = scalar_lea.hbm %s4200_s11, 256 }
 0x68b   :  { %p3522_p13 = scmp.ne.s32.totalorder %s4200_s11, %s3521_s19  ;;  %p3525_p0 = scmp.lt.u32.totalorder %s3521_s19, %s4200_s11 }
 0x68d   :  { %p3527_p1 = pnand %p3525_p0, %p3522_p13 }
 0x68f   :  { %3530 = shalt.err (!%p3527_p1)
}
 0x690   :  { %2992 = dma.vmem_to_hbm [thread:$0]  %s2987_s6, 256, %s4200_s11, [#allocation4], %s3545_s15, %s3545_s15, %s3546_s16  }
 0x691   :  { %3539 = dma.done.wait [#allocation4], 256  }
 0x692   :  { %3540 = vsyncadd [#allocation4], 4294967040 }
 0x693   :  { %3541 = dma.done.wait [#allocation16], 1024  }
 0x694   :  { %3542 = vsyncadd [#allocation16], 4294966272 }
 0x695   :  { %3011 = vsyncpa [#allocation3], 1 }
 0x696   :  { %3012 = vsyncpa [#allocation6], 1 }
 0x697   :  { %3013 = vsyncpa [#allocation9], 1 }
 0x698   :  { %3014 = vsyncpa [#allocation12], 1 }
 0x699   :  { %3015 = vsyncpa [#allocation4], 1 }
 0x69a   :  { %3016 = vsyncpa [#allocation16], 1 }

</bundles_post_ra>
